<compile_context>
chip_gen: v6e
topology: v6e:2x2x1
jax: 0.10.0
libtpu: 0.0.40
codegen_flags: <defaults>
</compile_context>

<pallas_src>
import functools

import jax
import jax.numpy as jnp
from jax.experimental import pallas as pl
from jax.experimental.pallas import tpu as pltpu


def _conv_chain_kernel(s_ref, x_ref, w_ref, b_ref, o_ref, col_ref,
                       *, Nb, KH, KW, Cin, Wp, L):
    """Processes Nb images per grid step.

    s_ref   : SMEM (2,) f32            -> [p2, p2 / t1]
    x_ref   : VMEM (Nb, Cin, LXP)      flat zero-padded inputs (padded in wrapper)
    w_ref   : VMEM (Cout, KH*KW*Cin)   conv weight, im2col ordered
    b_ref   : VMEM (Cout, 1)           conv bias (f32)
    o_ref   : VMEM (Nb, Cout, L)       lane-dense strided output slab (f32)
    col_ref : VMEM (KH*KW*Cin, Nb*L)   im2col slab scratch
    """
    # --- im2col: every tap (kh, kw) is one contiguous lane slice of the flat
    #     padded image (row stride Wp); no reshapes / transposes in-kernel. ---
    for b in range(Nb):
        for kh in range(KH):
            for kw in range(KW):
                t = kh * KW + kw
                off = kh * Wp + kw
                col_ref[t * Cin:(t + 1) * Cin, b * L:(b + 1) * L] = (
                    x_ref[b, :, off:off + L].astype(col_ref.dtype))

    # --- one MXU matmul for the whole batch tile --------------------------
    acc = jnp.dot(w_ref[...], col_ref[...],
                  preferred_element_type=jnp.float32)        # (Cout, Nb*L)
    acc = acc + b_ref[...]                                   # conv bias

    # --- folded elementwise tail:  relu(conv + p2) * (p2 / t1) -------------
    p2 = s_ref[0]
    scale = s_ref[1]
    v = jnp.maximum(acc + p2, 0.0) * scale

    # --- lane-dense output stores (stride columns dropped in the wrapper) --
    for b in range(Nb):
        o_ref[b, :, :] = v[:, b * L:(b + 1) * L].astype(o_ref.dtype)


def _pick_batch_tile(N, per_image_bytes, budget_bytes=8 << 20):
    """Largest divisor of N fitting the VMEM budget, keeping >=2 grid steps."""
    best = 1
    for nb in range(1, N + 1):
        if N % nb:
            continue
        if nb * per_image_bytes > budget_bytes:
            break
        if N >= 2 and N // nb < 2:   # keep both TensorCores busy on v7x
            break
        best = nb
    return best


def model_forward(x_nchw, weight_oihw, bias, p2=0.0, t1=6.0, *, padding=1,
                  skip_dead_compute=True, batch_tile=None,
                  dot_dtype=jnp.bfloat16):
    """Full Model.forward.  x_nchw: (N, Cin, H, W) float32 (PyTorch NCHW)."""
    N, Cin, H, W = x_nchw.shape
    Cout, Cin_w, KH, KW = weight_oihw.shape
    assert Cin_w == Cin
    Ho = H + 2 * padding - KH + 1          # stride = 1
    Wo = W + 2 * padding - KW + 1

    # p2 == 0 (the module's literal constant) annihilates the output: plain
    # XLA fill, no custom-call launch, no whole-output VMEM staging.
    # NOTE: deviates from PyTorch only where the conv output would be NaN/Inf
    # (PyTorch yields NaN there via 0 * Inf).
    if skip_dead_compute and isinstance(p2, (int, float)) and p2 == 0:
        return jnp.zeros((N, Cout, Ho, Wo), jnp.float32)

    # ---- general path: conv really computed (runtime p2 / t1) --------------
    Hp = H + 2 * padding
    Wp = W + 2 * padding
    KKC = KH * KW * Cin
    L = Ho * Wp                    # strided-flat matmul width per image
    LXP = (Hp + 1) * Wp            # + one spare zero row -> tap slices in-bounds

    # Zero-pad + flatten in the wrapper (keeps masked stores out of the kernel).
    x_pad = jnp.pad(
        x_nchw, ((0, 0), (0, 0), (padding, padding + 1), (padding, padding)))
    x_flat = x_pad.reshape(N, Cin, LXP).astype(dot_dtype)

    # weight (Cout, Cin, KH, KW) -> (Cout, KKC); column = (kh*KW + kw)*Cin + c.
    w2 = jnp.transpose(weight_oihw, (0, 2, 3, 1)).reshape(Cout, KKC)
    w2 = w2.astype(dot_dtype)
    b2 = bias.reshape(Cout, 1).astype(jnp.float32)
    scalars = jnp.array([p2, p2 / t1], dtype=jnp.float32)

    itm = jnp.dtype(dot_dtype).itemsize
    per_img = Cin * LXP * itm + KKC * L * itm + Cout * L * 4
    Nb = batch_tile if batch_tile is not None else _pick_batch_tile(N, 2 * per_img)
    assert N % Nb == 0, (N, Nb)
    G = N // Nb

    # Explicit, headroom-respecting scoped-VMEM limit (matters for large Nb).
    vmem_est = (2 * Nb * (Cin * LXP * itm + Cout * L * 4)   # dbl-buffered blocks
                + Nb * KKC * L * itm                        # im2col scratch
                + Cout * KKC * itm + Cout * 4 + (1 << 20))
    vmem_limit = int(min(max(2 * vmem_est, 16 << 20), 48 << 20))

    kernel = functools.partial(
        _conv_chain_kernel, Nb=Nb, KH=KH, KW=KW, Cin=Cin, Wp=Wp, L=L)

    out = pl.pallas_call(
        kernel,
        out_shape=jax.ShapeDtypeStruct((N, Cout, L), jnp.float32),
        grid=(G,),
        in_specs=[
            pl.BlockSpec(memory_space=pltpu.MemorySpace.SMEM),   # [p2, p2/t1]
            pl.BlockSpec((Nb, Cin, LXP), lambda g: (g, 0, 0)),   # padded input
            pl.BlockSpec((Cout, KKC), lambda g: (0, 0)),         # weight
            pl.BlockSpec((Cout, 1), lambda g: (0, 0)),           # bias
        ],
        out_specs=pl.BlockSpec((Nb, Cout, L), lambda g: (g, 0, 0)),
        scratch_shapes=[pltpu.VMEM((KKC, Nb * L), dot_dtype)],   # im2col slab
        compiler_params=pltpu.CompilerParams(
            dimension_semantics=("parallel",),
            vmem_limit_bytes=vmem_limit),
    )(scalars, x_flat, w2, b2)

    # (N, Cout, Ho*Wp) lane-dense slab -> drop the stride columns here (free
    # reshape + cheap slice in XLA, no transpose).
    return out.reshape(N, Cout, Ho, Wp)[..., :Wo]


def _reference(x, w, b, p2, t1):
    """Pure-JAX reference of the PyTorch forward (for validation only)."""
    y = jax.lax.conv_general_dilated(
        x, w, window_strides=(1, 1), padding=((1, 1), (1, 1)),
        dimension_numbers=("NCHW", "OIHW", "NCHW"))
    y = y + b.reshape(1, -1, 1, 1)
    y = y + p2
    y = jnp.maximum(y, 0.0)
    y = y * p2
    return y / t1


if __name__ == "__main__":
    # Small deterministic setup: Cin=3 fixed by the module, ch1 (Cout)=8, p1=3.
    N, Cin, H, W = 4, 3, 16, 16
    Cout, K = 8, 3

    key = jax.random.PRNGKey(0)
    kx, kw_, kb = jax.random.split(key, 3)
    x = jax.random.normal(kx, (N, Cin, H, W), dtype=jnp.float32)
    weight = jax.random.normal(kw_, (Cout, Cin, K, K), dtype=jnp.float32) * 0.1
    bias = jax.random.normal(kb, (Cout,), dtype=jnp.float32) * 0.1

    # 1) Exact module semantics (p2 = 0): dead compute elided -> zeros.
    out = jax.block_until_ready(model_forward(x, weight, bias))
    assert out.shape == (N, Cout, H, W), out.shape
    assert out.dtype == jnp.float32
    assert bool(jnp.all(out == 0.0))

    # 2) Same module constants, forced through the Pallas conv kernel.
    out_full = jax.block_until_ready(
        model_forward(x, weight, bias, p2=0.0, t1=6.0, skip_dead_compute=False))
    assert out_full.shape == (N, Cout, H, W)
    assert bool(jnp.all(out_full == 0.0))

    # 3) Conv kernel validated with a non-annihilating scalar (p2 = 1).
    out_g = jax.block_until_ready(
        model_forward(x, weight, bias, p2=1.0, t1=6.0, skip_dead_compute=False))
    ref_g = _reference(x, weight, bias, 1.0, 6.0)
    assert out_g.shape == ref_g.shape
    assert bool(jnp.allclose(out_g, ref_g, rtol=2e-2, atol=2e-2))

    print("KERNEL_OK")
</pallas_src>

<mosaic_0001>
module attributes {stable_mosaic.version = 11 : i64} {
  func.func @_conv_chain_kernel(%arg0: i32, %arg1: memref<2xf32, #tpu.memory_space<smem>>, %arg2: memref<2x3x342xbf16, #tpu.memory_space<vmem>>, %arg3: memref<8x27xbf16, #tpu.memory_space<vmem>>, %arg4: memref<8x1xf32, #tpu.memory_space<vmem>>, %arg5: memref<2x8x288xf32, #tpu.memory_space<vmem>>, %arg6: memref<27x576xbf16, #tpu.memory_space<vmem>>) attributes {dimension_semantics = [#tpu.dimension_semantics<parallel>], iteration_bounds = array<i64: 2>, scalar_prefetch = 0 : i64, scratch_operands = 1 : i64, tpu.core_type = #tpu.core_type<tc>, window_params = [{transform_indices = @transform_0, window_bounds = array<i64: 2>}, {transform_indices = @transform_1, window_bounds = array<i64: 2, 3, 342>}, {pipeline_mode = #tpu.pipeline_mode<synchronous>, transform_indices = @transform_2, window_bounds = array<i64: 8, 27>}, {pipeline_mode = #tpu.pipeline_mode<synchronous>, transform_indices = @transform_3, window_bounds = array<i64: 8, 1>}, {transform_indices = @transform_4, window_bounds = array<i64: 2, 8, 288>}]} {
    %c0 = arith.constant 0 : index
    %c0_0 = arith.constant 0 : index
    %c0_1 = arith.constant 0 : index
    %0 = vector.load %arg2[%c0, %c0_0, %c0_1] : memref<2x3x342xbf16, #tpu.memory_space<vmem>>, vector<1x3x288xbf16>
    %1 = vector.shape_cast %0 : vector<1x3x288xbf16> to vector<3x288xbf16>
    %c0_2 = arith.constant 0 : index
    %c0_3 = arith.constant 0 : index
    %2 = vector.load %arg6[%c0_2, %c0_3] : memref<27x576xbf16, #tpu.memory_space<vmem>>, vector<3x288xbf16>
    tpu.vector_store %arg6[%c0_2, %c0_3], %1 {strides = array<i32>} : memref<27x576xbf16, #tpu.memory_space<vmem>>, vector<3x288xbf16>,
    %c0_4 = arith.constant 0 : index
    %c0_5 = arith.constant 0 : index
    %c1 = arith.constant 1 : index
    %3 = vector.load %arg2[%c0_4, %c0_5, %c1] : memref<2x3x342xbf16, #tpu.memory_space<vmem>>, vector<1x3x288xbf16>
    %4 = vector.shape_cast %3 : vector<1x3x288xbf16> to vector<3x288xbf16>
    %c3 = arith.constant 3 : index
    %c0_6 = arith.constant 0 : index
    %5 = vector.load %arg6[%c3, %c0_6] : memref<27x576xbf16, #tpu.memory_space<vmem>>, vector<3x288xbf16>
    tpu.vector_store %arg6[%c3, %c0_6], %4 {strides = array<i32>} : memref<27x576xbf16, #tpu.memory_space<vmem>>, vector<3x288xbf16>,
    %c0_7 = arith.constant 0 : index
    %c0_8 = arith.constant 0 : index
    %c2 = arith.constant 2 : index
    %6 = vector.load %arg2[%c0_7, %c0_8, %c2] : memref<2x3x342xbf16, #tpu.memory_space<vmem>>, vector<1x3x288xbf16>
    %7 = vector.shape_cast %6 : vector<1x3x288xbf16> to vector<3x288xbf16>
    %c6 = arith.constant 6 : index
    %c0_9 = arith.constant 0 : index
    %8 = vector.load %arg6[%c6, %c0_9] : memref<27x576xbf16, #tpu.memory_space<vmem>>, vector<3x288xbf16>
    tpu.vector_store %arg6[%c6, %c0_9], %7 {strides = array<i32>} : memref<27x576xbf16, #tpu.memory_space<vmem>>, vector<3x288xbf16>,
    %c0_10 = arith.constant 0 : index
    %c0_11 = arith.constant 0 : index
    %c18 = arith.constant 18 : index
    %9 = vector.load %arg2[%c0_10, %c0_11, %c18] : memref<2x3x342xbf16, #tpu.memory_space<vmem>>, vector<1x3x288xbf16>
    %10 = vector.shape_cast %9 : vector<1x3x288xbf16> to vector<3x288xbf16>
    %c9 = arith.constant 9 : index
    %c0_12 = arith.constant 0 : index
    %11 = vector.load %arg6[%c9, %c0_12] : memref<27x576xbf16, #tpu.memory_space<vmem>>, vector<3x288xbf16>
    tpu.vector_store %arg6[%c9, %c0_12], %10 {strides = array<i32>} : memref<27x576xbf16, #tpu.memory_space<vmem>>, vector<3x288xbf16>,
    %c0_13 = arith.constant 0 : index
    %c0_14 = arith.constant 0 : index
    %c19 = arith.constant 19 : index
    %12 = vector.load %arg2[%c0_13, %c0_14, %c19] : memref<2x3x342xbf16, #tpu.memory_space<vmem>>, vector<1x3x288xbf16>
    %13 = vector.shape_cast %12 : vector<1x3x288xbf16> to vector<3x288xbf16>
    %c12 = arith.constant 12 : index
    %c0_15 = arith.constant 0 : index
    %14 = vector.load %arg6[%c12, %c0_15] : memref<27x576xbf16, #tpu.memory_space<vmem>>, vector<3x288xbf16>
    tpu.vector_store %arg6[%c12, %c0_15], %13 {strides = array<i32>} : memref<27x576xbf16, #tpu.memory_space<vmem>>, vector<3x288xbf16>,
    %c0_16 = arith.constant 0 : index
    %c0_17 = arith.constant 0 : index
    %c20 = arith.constant 20 : index
    %15 = vector.load %arg2[%c0_16, %c0_17, %c20] : memref<2x3x342xbf16, #tpu.memory_space<vmem>>, vector<1x3x288xbf16>
    %16 = vector.shape_cast %15 : vector<1x3x288xbf16> to vector<3x288xbf16>
    %c15 = arith.constant 15 : index
    %c0_18 = arith.constant 0 : index
    %17 = vector.load %arg6[%c15, %c0_18] : memref<27x576xbf16, #tpu.memory_space<vmem>>, vector<3x288xbf16>
    tpu.vector_store %arg6[%c15, %c0_18], %16 {strides = array<i32>} : memref<27x576xbf16, #tpu.memory_space<vmem>>, vector<3x288xbf16>,
    %c0_19 = arith.constant 0 : index
    %c0_20 = arith.constant 0 : index
    %c36 = arith.constant 36 : index
    %18 = vector.load %arg2[%c0_19, %c0_20, %c36] : memref<2x3x342xbf16, #tpu.memory_space<vmem>>, vector<1x3x288xbf16>
    %19 = vector.shape_cast %18 : vector<1x3x288xbf16> to vector<3x288xbf16>
    %c18_21 = arith.constant 18 : index
    %c0_22 = arith.constant 0 : index
    %20 = vector.load %arg6[%c18_21, %c0_22] : memref<27x576xbf16, #tpu.memory_space<vmem>>, vector<3x288xbf16>
    tpu.vector_store %arg6[%c18_21, %c0_22], %19 {strides = array<i32>} : memref<27x576xbf16, #tpu.memory_space<vmem>>, vector<3x288xbf16>,
    %c0_23 = arith.constant 0 : index
    %c0_24 = arith.constant 0 : index
    %c37 = arith.constant 37 : index
    %21 = vector.load %arg2[%c0_23, %c0_24, %c37] : memref<2x3x342xbf16, #tpu.memory_space<vmem>>, vector<1x3x288xbf16>
    %22 = vector.shape_cast %21 : vector<1x3x288xbf16> to vector<3x288xbf16>
    %c21 = arith.constant 21 : index
    %c0_25 = arith.constant 0 : index
    %23 = vector.load %arg6[%c21, %c0_25] : memref<27x576xbf16, #tpu.memory_space<vmem>>, vector<3x288xbf16>
    tpu.vector_store %arg6[%c21, %c0_25], %22 {strides = array<i32>} : memref<27x576xbf16, #tpu.memory_space<vmem>>, vector<3x288xbf16>,
    %c0_26 = arith.constant 0 : index
    %c0_27 = arith.constant 0 : index
    %c38 = arith.constant 38 : index
    %24 = vector.load %arg2[%c0_26, %c0_27, %c38] : memref<2x3x342xbf16, #tpu.memory_space<vmem>>, vector<1x3x288xbf16>
    %25 = vector.shape_cast %24 : vector<1x3x288xbf16> to vector<3x288xbf16>
    %c24 = arith.constant 24 : index
    %c0_28 = arith.constant 0 : index
    %26 = vector.load %arg6[%c24, %c0_28] : memref<27x576xbf16, #tpu.memory_space<vmem>>, vector<3x288xbf16>
    tpu.vector_store %arg6[%c24, %c0_28], %25 {strides = array<i32>} : memref<27x576xbf16, #tpu.memory_space<vmem>>, vector<3x288xbf16>,
    %c1_29 = arith.constant 1 : index
    %c0_30 = arith.constant 0 : index
    %c0_31 = arith.constant 0 : index
    %27 = vector.load %arg2[%c1_29, %c0_30, %c0_31] : memref<2x3x342xbf16, #tpu.memory_space<vmem>>, vector<1x3x288xbf16>
    %28 = vector.shape_cast %27 : vector<1x3x288xbf16> to vector<3x288xbf16>
    %c0_32 = arith.constant 0 : index
    %c288 = arith.constant 288 : index
    %29 = vector.load %arg6[%c0_32, %c288] : memref<27x576xbf16, #tpu.memory_space<vmem>>, vector<3x288xbf16>
    tpu.vector_store %arg6[%c0_32, %c288], %28 {strides = array<i32>} : memref<27x576xbf16, #tpu.memory_space<vmem>>, vector<3x288xbf16>,
    %c1_33 = arith.constant 1 : index
    %c0_34 = arith.constant 0 : index
    %c1_35 = arith.constant 1 : index
    %30 = vector.load %arg2[%c1_33, %c0_34, %c1_35] : memref<2x3x342xbf16, #tpu.memory_space<vmem>>, vector<1x3x288xbf16>
    %31 = vector.shape_cast %30 : vector<1x3x288xbf16> to vector<3x288xbf16>
    %c3_36 = arith.constant 3 : index
    %c288_37 = arith.constant 288 : index
    %32 = vector.load %arg6[%c3_36, %c288_37] : memref<27x576xbf16, #tpu.memory_space<vmem>>, vector<3x288xbf16>
    tpu.vector_store %arg6[%c3_36, %c288_37], %31 {strides = array<i32>} : memref<27x576xbf16, #tpu.memory_space<vmem>>, vector<3x288xbf16>,
    %c1_38 = arith.constant 1 : index
    %c0_39 = arith.constant 0 : index
    %c2_40 = arith.constant 2 : index
    %33 = vector.load %arg2[%c1_38, %c0_39, %c2_40] : memref<2x3x342xbf16, #tpu.memory_space<vmem>>, vector<1x3x288xbf16>
    %34 = vector.shape_cast %33 : vector<1x3x288xbf16> to vector<3x288xbf16>
    %c6_41 = arith.constant 6 : index
    %c288_42 = arith.constant 288 : index
    %35 = vector.load %arg6[%c6_41, %c288_42] : memref<27x576xbf16, #tpu.memory_space<vmem>>, vector<3x288xbf16>
    tpu.vector_store %arg6[%c6_41, %c288_42], %34 {strides = array<i32>} : memref<27x576xbf16, #tpu.memory_space<vmem>>, vector<3x288xbf16>,
    %c1_43 = arith.constant 1 : index
    %c0_44 = arith.constant 0 : index
    %c18_45 = arith.constant 18 : index
    %36 = vector.load %arg2[%c1_43, %c0_44, %c18_45] : memref<2x3x342xbf16, #tpu.memory_space<vmem>>, vector<1x3x288xbf16>
    %37 = vector.shape_cast %36 : vector<1x3x288xbf16> to vector<3x288xbf16>
    %c9_46 = arith.constant 9 : index
    %c288_47 = arith.constant 288 : index
    %38 = vector.load %arg6[%c9_46, %c288_47] : memref<27x576xbf16, #tpu.memory_space<vmem>>, vector<3x288xbf16>
    tpu.vector_store %arg6[%c9_46, %c288_47], %37 {strides = array<i32>} : memref<27x576xbf16, #tpu.memory_space<vmem>>, vector<3x288xbf16>,
    %c1_48 = arith.constant 1 : index
    %c0_49 = arith.constant 0 : index
    %c19_50 = arith.constant 19 : index
    %39 = vector.load %arg2[%c1_48, %c0_49, %c19_50] : memref<2x3x342xbf16, #tpu.memory_space<vmem>>, vector<1x3x288xbf16>
    %40 = vector.shape_cast %39 : vector<1x3x288xbf16> to vector<3x288xbf16>
    %c12_51 = arith.constant 12 : index
    %c288_52 = arith.constant 288 : index
    %41 = vector.load %arg6[%c12_51, %c288_52] : memref<27x576xbf16, #tpu.memory_space<vmem>>, vector<3x288xbf16>
    tpu.vector_store %arg6[%c12_51, %c288_52], %40 {strides = array<i32>} : memref<27x576xbf16, #tpu.memory_space<vmem>>, vector<3x288xbf16>,
    %c1_53 = arith.constant 1 : index
    %c0_54 = arith.constant 0 : index
    %c20_55 = arith.constant 20 : index
    %42 = vector.load %arg2[%c1_53, %c0_54, %c20_55] : memref<2x3x342xbf16, #tpu.memory_space<vmem>>, vector<1x3x288xbf16>
    %43 = vector.shape_cast %42 : vector<1x3x288xbf16> to vector<3x288xbf16>
    %c15_56 = arith.constant 15 : index
    %c288_57 = arith.constant 288 : index
    %44 = vector.load %arg6[%c15_56, %c288_57] : memref<27x576xbf16, #tpu.memory_space<vmem>>, vector<3x288xbf16>
    tpu.vector_store %arg6[%c15_56, %c288_57], %43 {strides = array<i32>} : memref<27x576xbf16, #tpu.memory_space<vmem>>, vector<3x288xbf16>,
    %c1_58 = arith.constant 1 : index
    %c0_59 = arith.constant 0 : index
    %c36_60 = arith.constant 36 : index
    %45 = vector.load %arg2[%c1_58, %c0_59, %c36_60] : memref<2x3x342xbf16, #tpu.memory_space<vmem>>, vector<1x3x288xbf16>
    %46 = vector.shape_cast %45 : vector<1x3x288xbf16> to vector<3x288xbf16>
    %c18_61 = arith.constant 18 : index
    %c288_62 = arith.constant 288 : index
    %47 = vector.load %arg6[%c18_61, %c288_62] : memref<27x576xbf16, #tpu.memory_space<vmem>>, vector<3x288xbf16>
    tpu.vector_store %arg6[%c18_61, %c288_62], %46 {strides = array<i32>} : memref<27x576xbf16, #tpu.memory_space<vmem>>, vector<3x288xbf16>,
    %c1_63 = arith.constant 1 : index
    %c0_64 = arith.constant 0 : index
    %c37_65 = arith.constant 37 : index
    %48 = vector.load %arg2[%c1_63, %c0_64, %c37_65] : memref<2x3x342xbf16, #tpu.memory_space<vmem>>, vector<1x3x288xbf16>
    %49 = vector.shape_cast %48 : vector<1x3x288xbf16> to vector<3x288xbf16>
    %c21_66 = arith.constant 21 : index
    %c288_67 = arith.constant 288 : index
    %50 = vector.load %arg6[%c21_66, %c288_67] : memref<27x576xbf16, #tpu.memory_space<vmem>>, vector<3x288xbf16>
    tpu.vector_store %arg6[%c21_66, %c288_67], %49 {strides = array<i32>} : memref<27x576xbf16, #tpu.memory_space<vmem>>, vector<3x288xbf16>,
    %c1_68 = arith.constant 1 : index
    %c0_69 = arith.constant 0 : index
    %c38_70 = arith.constant 38 : index
    %51 = vector.load %arg2[%c1_68, %c0_69, %c38_70] : memref<2x3x342xbf16, #tpu.memory_space<vmem>>, vector<1x3x288xbf16>
    %52 = vector.shape_cast %51 : vector<1x3x288xbf16> to vector<3x288xbf16>
    %c24_71 = arith.constant 24 : index
    %c288_72 = arith.constant 288 : index
    %53 = vector.load %arg6[%c24_71, %c288_72] : memref<27x576xbf16, #tpu.memory_space<vmem>>, vector<3x288xbf16>
    tpu.vector_store %arg6[%c24_71, %c288_72], %52 {strides = array<i32>} : memref<27x576xbf16, #tpu.memory_space<vmem>>, vector<3x288xbf16>,
    %c0_73 = arith.constant 0 : index
    %c0_74 = arith.constant 0 : index
    %54 = vector.load %arg3[%c0_73, %c0_74] : memref<8x27xbf16, #tpu.memory_space<vmem>>, vector<8x27xbf16>
    %c0_75 = arith.constant 0 : index
    %c0_76 = arith.constant 0 : index
    %55 = vector.load %arg6[%c0_75, %c0_76] : memref<27x576xbf16, #tpu.memory_space<vmem>>, vector<27x576xbf16>
    %cst = arith.constant dense<0.000000e+00> : vector<8x576xf32>
    %56 = tpu.matmul %54, %55, %cst {dimension_numbers = #tpu.dot_dimension_numbers<[1], [0], [0], [1], [0, 0, 1, 1], [], []>} : vector<8x27xbf16>, vector<27x576xbf16>, vector<8x576xf32> -> vector<8x576xf32>
    %c0_77 = arith.constant 0 : index
    %c0_78 = arith.constant 0 : index
    %57 = vector.load %arg4[%c0_77, %c0_78] : memref<8x1xf32, #tpu.memory_space<vmem>>, vector<8x1xf32>
    %58 = vector.broadcast %57 : vector<8x1xf32> to vector<8x576xf32>
    %59 = arith.addf %56, %58 : vector<8x576xf32>
    %c0_79 = arith.constant 0 : index
    %60 = memref.load %arg1[%c0_79] : memref<2xf32, #tpu.memory_space<smem>>
    %c1_80 = arith.constant 1 : index
    %61 = memref.load %arg1[%c1_80] : memref<2xf32, #tpu.memory_space<smem>>
    %62 = vector.broadcast %60 : f32 to vector<8x576xf32>
    %63 = arith.addf %59, %62 : vector<8x576xf32>
    %cst_81 = arith.constant 0.000000e+00 : f32
    %64 = vector.broadcast %cst_81 : f32 to vector<8x576xf32>
    %65 = arith.maximumf %63, %64 : vector<8x576xf32>
    %66 = vector.broadcast %61 : f32 to vector<8x576xf32>
    %67 = arith.mulf %65, %66 : vector<8x576xf32>
    %68 = vector.extract_strided_slice %67 {offsets = [0, 0], sizes = [8, 288], strides = [1, 1]} : vector<8x576xf32> to vector<8x288xf32>
    %c0_82 = arith.constant 0 : index
    %c0_83 = arith.constant 0 : index
    %c0_84 = arith.constant 0 : index
    %69 = vector.load %arg5[%c0_82, %c0_83, %c0_84] : memref<2x8x288xf32, #tpu.memory_space<vmem>>, vector<1x8x288xf32>
    %70 = vector.shape_cast %69 : vector<1x8x288xf32> to vector<8x288xf32>
    %71 = vector.shape_cast %68 : vector<8x288xf32> to vector<1x8x288xf32>
    tpu.vector_store %arg5[%c0_82, %c0_83, %c0_84], %71 {strides = array<i32>} : memref<2x8x288xf32, #tpu.memory_space<vmem>>, vector<1x8x288xf32>,
    %72 = vector.extract_strided_slice %67 {offsets = [0, 288], sizes = [8, 288], strides = [1, 1]} : vector<8x576xf32> to vector<8x288xf32>
    %c1_85 = arith.constant 1 : index
    %c0_86 = arith.constant 0 : index
    %c0_87 = arith.constant 0 : index
    %73 = vector.load %arg5[%c1_85, %c0_86, %c0_87] : memref<2x8x288xf32, #tpu.memory_space<vmem>>, vector<1x8x288xf32>
    %74 = vector.shape_cast %73 : vector<1x8x288xf32> to vector<8x288xf32>
    %75 = vector.shape_cast %72 : vector<8x288xf32> to vector<1x8x288xf32>
    tpu.vector_store %arg5[%c1_85, %c0_86, %c0_87], %75 {strides = array<i32>} : memref<2x8x288xf32, #tpu.memory_space<vmem>>, vector<1x8x288xf32>,
    return
  }
  func.func @transform_0(%arg0: i32) -> i32 {
    %c0_i32 = arith.constant 0 : i32
    %c0_i32_0 = arith.constant 0 : i32
    return %c0_i32 : i32
  }
  func.func @transform_1(%arg0: i32) -> (i32, i32, i32) {
    %c0_i32 = arith.constant 0 : i32
    %c0_i32_0 = arith.constant 0 : i32
    %c0_i32_1 = arith.constant 0 : i32
    return %arg0, %c0_i32, %c0_i32_0 : i32, i32, i32
  }
  func.func @transform_2(%arg0: i32) -> (i32, i32) {
    %c0_i32 = arith.constant 0 : i32
    %c0_i32_0 = arith.constant 0 : i32
    %c0_i32_1 = arith.constant 0 : i32
    return %c0_i32, %c0_i32_0 : i32, i32
  }
  func.func @transform_3(%arg0: i32) -> (i32, i32) {
    %c0_i32 = arith.constant 0 : i32
    %c0_i32_0 = arith.constant 0 : i32
    %c0_i32_1 = arith.constant 0 : i32
    return %c0_i32, %c0_i32_0 : i32, i32
  }
  func.func @transform_4(%arg0: i32) -> (i32, i32, i32) {
    %c0_i32 = arith.constant 0 : i32
    %c0_i32_0 = arith.constant 0 : i32
    %c0_i32_1 = arith.constant 0 : i32
    return %arg0, %c0_i32, %c0_i32_0 : i32, i32, i32
  }
}

</mosaic_0001>

<bundles_post_ra>
// kernel: tpu_custom_call.1
= control target key start
LH: loop header
LB: loop body
LE: loop exit
PB: predicated region body
PF: predicated region fallthrough
CT: control target
= control target key end

     0   :  { %9 = vsyncpa [#allocation5], 0  ;;  %s2480_s0 = inlined_call_operand.vmem [shape: f32[2], index: 0, kind: input, shape index: {}]   ;;  %s2481_s1 = inlined_call_operand.vmem [shape: bf16[4,3,342], index: 1, kind: input, shape index: {}]   ;;  %s2482_s2 = inlined_call_operand.vmem [shape: bf16[8,27], index: 2, kind: input, shape index: {}]   ;;  %s2483_s3 = inlined_call_operand.vmem [shape: f32[8,1], index: 3, kind: input, shape index: {}]   ;;  %s2484_s4 = inlined_call_operand.hbm [shape: f32[4,8,288], index: 4, kind: output, shape index: {}]  }
   0x1   :  { %10 = vsyncpa [#allocation4], 0 }
   0x2   :  { %12 = vsyncpa [#allocation4 + $0x1], 0  ;;  %s1750_s15 = smov 0   ;;  %s1752_s16 = smov 0  }
   0x3   :  { %s1754_s17 = smov 0   ;;  %s1756_s18 = smov 0  }
   0x4 LB: > { %s1771_s19 = sadd.s32 4294967295, %s1696_s18   ;;  %s1451_s20 = sadd.s32 4294967294, %s1696_s18   ;;  %s1696_s18 = sphi %s1756_s18, %s2672_s18   ;;  %s1692_s17 = sphi %s1754_s17, %s2671_s17   ;;  %s1688_s16 = sphi %s1752_s16, %s2670_s16   ;;  %s1684_s15 = sphi %s1750_s15, %s2669_s15  }
   0x5   : > { %s1775_s21 = sadd.s32 1, %s1696_s18   ;;  %s114_s22 = sadd.s32 1, %s1692_s17 }
   0x6   : > { %s111_s23 = ssub.s32 %s1696_s18, %s1775_s21  ;;  %p124_p0 = scmp.ne.s32.totalorder %s1692_s17, %s1688_s16 }
   0x7   : > { %p112_p1 = scmp.eq.s32.totalorder %s111_s23, 0  ;;  %p125_p2 = scmp.eq.s32.totalorder %s1771_s19, 1 }
   0x8   : > { %p130_p3 = scmp.ne.s32.totalorder %s1688_s16, %s1684_s15  ;;  %p131_p4 = scmp.eq.s32.totalorder %s1451_s20, 1 }
   0x9   : > { %s1786_s24 = scalar_select %p112_p1, %s1692_s17, %s114_s22  }
   0xa   : > { %p1788_p5 = por %p125_p2, %p124_p0  ;;  %p1792_p6 = por %p131_p4, %p130_p3 }
   0xb   : > { %p1452_p7 = scmp.ge.s32.totalorder %s1696_s18, 1  ;;  %p138_p8 = scmp.lt.s32.totalorder %s1696_s18, 3 }
   0xc   : > { %p1518_p9 = scmp.eq.s32.totalorder %s1771_s19, 0  ;;  %s151_s30 = sshll.u32 %s2480_s0, 4  ;;  %s152_s30 = int_to_ptr.vmem [resolvable:$true] %s151_s30 }
   0xd   : > { %p1799_p10 = pnand %p1452_p7, %p138_p8  ;;  %s1617_s5 = scalar_lea.vmem %s152_s30, 16 }
   0xe   : > { %p1618_p13 = scmp.ne.s32.totalorder %s152_s30, %s1617_s5  ;;  %p1625_p3 = scmp.lt.s32.totalorder %s152_s30, %s152_s30 }
   0xf   : > { %p1510_p11 = pneg %p1799_p10  ;;  %p1626_p4 = scmp.lt.s32.totalorder %s1617_s5, %s1617_s5 }
  0x11   : > { %p1511_p12 = pnand %p1518_p9, %p1510_p11  ;;  %p1627_p7 = por %p1626_p4, %p1625_p3 }
  0x13   : > { %p1619_p0 = pneg %p1511_p12 }
  0x15   : > { %p1620_p1 = pnand %p1619_p0, %p1618_p13 }
  0x17   : > { %p1621_p2 = pneg %p1620_p1 }
  0x19   : > { %p1628_p8 = pnand %p1627_p7, %p1621_p2 }
  0x1b   : > { %1631 = shalt.err (!%p1628_p8)
}
  0x1c   : > { %s1698_s6 = smov [#allocation3]   ;;  %180 = sbr.rel (%p1799_p10) target bundleno = 586 (0x24a), region = 36 }
  0x1d   : > { %1513 = dma.vmem_to_smem (!%p1511_p12), %s152_s30, 16, %s1698_s6, [#allocation5]  }
  0x21   : > { %1675 = dma.done.wait (%p1518_p9), [#allocation5], 16  }
  0x22   : > { %1677 = vsyncadd (%p1518_p9), [#allocation5], 4294967280 }
  0x23   : > { %186 = sfence }
  0x24   : > { %s1457_s7 = sshll.u32 %s1771_s19, 1  ;;  %v223_v0 = vlaneseq  ;;  %v1699_v1 = vmov 1983009808   ;;  %s1700_s12 = smov 109   ;;  %vm2486_vm0 = vsmask.f32 1280 }
  0x25   : > { %p209_p11 = scmp.lt.s32.totalorder %s1457_s7, 3  ;;  %v221_v2 = vunpack.c.l.s4 %v1699_v1  ;;  %s1701_s13 = smov 92   ;;  %vm2488_vm1 = vcmask 254976   ;;  %vm236_vm3 = vcmask 1041408   ;;  %vm239_vm4 = vcmask 1045508  }
  0x26   : > { %v224_v3 = vshrl.u32 %v223_v0, 7  ;;  %s1702_s14 = smov 124   ;;  %s1703_s20 = smov 126   ;;  %vm1904_vm2 = vmand %vm2488_vm1, %vm2486_vm0  ;;  %vm240_vm5 = vsmask.f32 5376  ;;  %vm2485_vm7 = vcmask 1041664  }
  0x27   : > { %s2674_s7 = smov (!%p209_p11, %s1457_s7), 3  ;;  %v222_v4 = vunpack.c.0.s8 %v221_v2  ;;  %s1704_s22 = smov 127   ;;  %vm1918_vm6 = vmand %vm236_vm3, %vm2486_vm0  ;;  %vm415_vm12 = vsmask.f32 7954  ;;  %vm2489_vm13 = vsmask.f32 7938 }
  0x28   : > { %s1502_s8 = smul.u32 6, %s2674_s7  ;;  %s1705_s23 = smov 91   ;;  %vm1924_vm8 = vmand %vm239_vm4, %vm240_vm5  ;;  %vm2493_vm5 = vcmask 257026   ;;  %vm2497_vm1 = vcmask 1042433  }
  0x29   : > { %v1817_v5 = vsub.s32 %v222_v4, %v224_v3  ;;  %s1706_s27 = smov 108   ;;  %s1707_s28 = smov 110   ;;  %vm2487_vm9 = vmor %vm1924_vm8, %vm1918_vm6 }
  0x2a   : > { %s1822_s11 = scalar_lea.vmem %s2481_s1, %s1502_s8  ;;  %s1708_s29 = smov 90   ;;  %vm1935_vm10 = vmand %vm2485_vm7, %vm2486_vm0  ;;  %vm2496_vm7 = vcmask 1047558   ;;  %vm457_vm0 = vsmask.f32 7424 }
  0x2b   : > { %v425_v6 = vld [vmem:[%s1822_s11] sm:$0x3f]  ;;  %v1465_v8 = vld [vmem:[%s1822_s11 + $0x6] sm:$0x3f]  ;;  %s1709_s30 = smov 32   ;;  %s1710_s5 = smov 13   ;;  %vm1965_vm14 = vmand %vm236_vm3, %vm2489_vm13 }
  0x2c   : > { %v542_v7 = vld [vmem:[%s1822_s11] sm:$0x3f]  ;;  %v441_v9 = vrot.slane %v425_v6, %v1817_v5  ;;  %v427_v10 = vcombine.low %v425_v6, %v425_v6  ;;  %v992_v15 = vrot.slane %v1465_v8, %v1817_v5  ;;  %v985_v16 = vcombine.high %v1465_v8, %v1465_v8  ;;  %s1711_s6 = smov 30   ;;  %s1712_s7 = smov 123   ;;  %vm1973_vm15 = vmand %vm239_vm4, %vm415_vm12 }
  0x2d   : > { %v551_v11 = vrot.slane %v542_v7, %v1817_v5  ;;  %v544_v12 = vcombine.high %v542_v7, %v542_v7  ;;  %v311_v13 = vld [vmem:[%s1822_s11] sm:$0x3f]  ;;  %s1713_s8 = smov 122   ;;  %s1714_s9 = smov 12   ;;  %vm2491_vm4 = vsmask.f32 3328 }
  0x2e   : > { %v1831_v14 = vld [vmem:[%s1822_s11] sm:$0x3f]  ;;  %v320_v17 = vrot.slane %v311_v13, %v1817_v5  ;;  %v313_v18 = vcombine.high %v311_v13, %v311_v13  ;;  %444 = vrot.lane.b32.xlu1 %v441_v9, %s1700_s12  ;;  %v434_v21 = vrot.slane %v427_v10, %v1817_v5  ;;  %v999_v25 = vrot.slane %v985_v16, %v1817_v5  ;;  %v1466_v10 = vld [vmem:[%s1822_s11 + $0x6] sm:$0x3f]  ;;  %s1715_s10 = smov 14   ;;  %vm464_vm3 = vmand %vm2493_vm5, %vm2491_vm4 }
  0x2f   : > { %v584_v19 = vld [vmem:[%s1822_s11] sm:$0x3f]  ;;  %v559_v22 = vrot.slane %v551_v11, 7  ;;  %v558_v23 = vrot.slane %v544_v12, %v1817_v5  ;;  %v253_v24 = vcombine.high %v1831_v14, %v1831_v14  ;;  %v1000_v32 = vrot.slane %v992_v15, 7  ;;  %v1871_v15 = vld [vmem:[%s1822_s11 + $0x6] sm:$0x3f] }
  0x30   : > { %v468_v20 = vld [vmem:[%s1822_s11] sm:$0x3f]  ;;  %v1843_v26 = vrot.slane %v313_v18, %v1817_v5  ;;  %442 = vrot.lane.b32.xlu0 %v434_v21, %s1700_s12  ;;  %v586_v29 = vcombine.high %v584_v19, %v584_v19  ;;  %v1849_v33 = vrot.slane %v320_v17, 5  ;;  %v1001_v41 = vrot.slane %v999_v25, 7  ;;  %v1874_v17 = vld [vmem:[%s1822_s11 + $0x6] sm:$0x3f] }
  0x31   : > { %v560_v27 = vrot.slane %v558_v23, 7  ;;  %v267_v28 = vrot.slane %v253_v24, %v1817_v5  ;;  %v470_v30 = vcombine.high %v468_v20, %v468_v20  ;;  %v1847_v31 = vld [vmem:[%s1822_s11] sm:$0x3f]  ;;  %v477_v34 = vrot.slane %v468_v20, %v1817_v5  ;;  %v1879_v20 = vld [vmem:[%s1822_s11 + $0x6] sm:$0x3f] }
  0x32   : > { %561 = vrot.lane.b32.xlu1 %v559_v22, %s1701_s13  ;;  %v600_v37 = vrot.slane %v586_v29, %v1817_v5  ;;  %v329_v39 = vrot.slane %v1843_v26, 5  ;;  %v373_v40 = vcombine.high %v1847_v31, %v1847_v31  ;;  %v330_v44 = vrot.slane %v1849_v33, 4  ;;  %v640_v2 = vld [vmem:[%s1822_s11] sm:$0x3f] }
  0x33   : > { %v277_v35 = vshrl.u32 %v267_v28, 16  ;;  %v280_v36 = vshll.u32 %v267_v28, 16  ;;  %v484_v38 = vrot.slane %v470_v30, %v1817_v5  ;;  %v486_v48 = vshll.u32 %v477_v34, 16 }
  0x34   : > { %563 = vrot.lane.b32.xlu0 %v560_v27, %s1701_s13  ;;  %v610_v42 = vshrl.u32 %v600_v37, 16  ;;  %v613_v43 = vshll.u32 %v600_v37, 16  ;;  %v387_v45 = vrot.slane %v373_v40, %v1817_v5  ;;  %v331_v50 = vrot.slane %v329_v39, 4 }
  0x35   : > { %v279_v46 = vrot.slane %v277_v35, 6  ;;  %v282_v47 = vrot.slane %v280_v36, 7  ;;  %v490_v49 = vshll.u32 %v484_v38, 16  ;;  %v593_v54 = vrot.slane %v584_v19, %v1817_v5 }
  0x36   : > { %1002 = vrot.lane.b32.xlu1 %v1000_v32, %s1702_s14  ;;  %v612_v51 = vrot.slane %v610_v42, 5  ;;  %v615_v52 = vrot.slane %v613_v43, 6  ;;  %v396_v53 = vshrl.u32 %v387_v45, 16  ;;  %v488_v56 = vrot.slane %v486_v48, 5 }
  0x37   : > { %v283_v55 = vor.u32 %v282_v47, %v279_v46  ;;  %v492_v57 = vrot.slane %v490_v49, 5  ;;  %v493_v58 = vshrl.u32 %v477_v34, 16  ;;  %v399_v59 = vshll.u32 %v387_v45, 16  ;;  %v1464_v47 = vld [vmem:[%s1822_s11 + $0x6] sm:$0x3f] }
  0x38   : > { %1004 = vrot.lane.b32.xlu0 %v1001_v41, %s1702_s14  ;;  %v616_v60 = vor.u32 %v615_v52, %v612_v51  ;;  %v398_v61 = vrot.slane %v396_v53, 7  ;;  %v602_v62 = vshrl.u32 %v593_v54, 16  ;;  %v605_v63 = vshll.u32 %v593_v54, 16  ;;  %v217_v41 = vld [vmem:[%s1822_s11] sm:$0x3f] }
  0x39   : > { %v1579_v0 = vpack.i.bf16 %v488_v56, %v492_v57  ;;  %v495_v1 = vrot.slane %v493_v58, 4  ;;  %v498_v7 = vshrl.u32 %v484_v38, 16  ;;  %v649_v8 = vrot.slane %v640_v2, %v1817_v5  ;;  %v248_v53 = vld [vmem:[#allocation2 + $0x8] sm:$0x3] }
  0x3a   : > { %336 = vrot.lane.b32.xlu1 %v330_v44, %s1703_s20  ;;  %v401_v3 = vor.u32 %v399_v59, %v398_v61  ;;  %v604_v4 = vrot.slane %v602_v62, 5  ;;  %v607_v6 = vrot.slane %v605_v63, 6  ;;  %v642_v12 = vcombine.high %v640_v2, %v640_v2 }
  0x3b   : > { %v496_v9 = vor.u32 %v495_v1, %v488_v56  ;;  %v500_v13 = vrot.slane %v498_v7, 4  ;;  %v380_v18 = vrot.slane %v1847_v31, %v1817_v5  ;;  %v1024_v19 = vcombine.high %v1466_v10, %v1466_v10  ;;  %v243_v1 = vld [vmem:[#allocation2] sm:$0x33] }
  0x3c   : > { %338 = vrot.lane.b32.xlu0 %v331_v50, %s1703_s20  ;;  %v608_v11 = vor.u32 %v607_v6, %v604_v4  ;;  %v776_v21 = vrot.slane %v1871_v15, %v1817_v5  ;;  %v260_v22 = vrot.slane %v1831_v14, %v1817_v5  ;;  %v656_v23 = vrot.slane %v642_v12, %v1817_v5 }
  0x3d   : > { %v497_v16 = vrot.slane %v496_v9, 4  ;;  %v501_v24 = vor.u32 %v500_v13, %v492_v57  ;;  %v876_v25 = vcombine.low %v1874_v17, %v1874_v17  ;;  %v684_v27 = vrot.slane %v1879_v20, %v1817_v5 }
  0x3e   : > { %286 = vrot.lane.b32.xlu1 %v283_v55, %s1704_s22  ;;  %v389_v28 = vshrl.u32 %v380_v18, 16  ;;  %v1038_v29 = vrot.slane %v1024_v19, %v1817_v5  ;;  %v1892_v30 = vrot.slane %v776_v21, 5  ;;  %v269_v31 = vshrl.u32 %v260_v22, 16  ;;  %v1467_v55 = vld [vmem:[%s1822_s11 + $0x6] sm:$0x3f] }
  0x3f   : > { %v272_v14 = vshll.u32 %v260_v22, 16  ;;  %v502_v32 = vrot.slane %v501_v24, 4  ;;  %v1031_v34 = vrot.slane %v1466_v10, %v1817_v5  ;;  %v883_v35 = vrot.slane %v876_v25, %v1817_v5  ;;  %v1460_v21 = vld [vmem:[%s1822_s11 + $0x6] sm:$0x3f] }
  0x40   : > { %619 = vrot.lane.b32.xlu0 %v616_v60, %s1705_s23  ;;  %v391_v36 = vrot.slane %v389_v28, 7  ;;  %v392_v37 = vshll.u32 %v380_v18, 16  ;;  %v1048_v38 = vshrl.u32 %v1038_v29, 16  ;;  %v1051_v40 = vshll.u32 %v1038_v29, 16 }
  0x41   : > { %v786_v42 = vrot.slane %v1892_v30, 4  ;;  %v271_v43 = vrot.slane %v269_v31, 6  ;;  %v274_v44 = vrot.slane %v272_v14, 7  ;;  %v1040_v45 = vshrl.u32 %v1031_v34, 16 }
  0x42   : > { %1580 = vrot.lane.b32.xlu1 %v1579_v0, %s1706_s27  ;;  %v1043_v46 = vshll.u32 %v1031_v34, 16  ;;  %v219_v48 = vcombine.high %v217_v41, %v217_v41  ;;  %v394_v49 = vor.u32 %v392_v37, %v391_v36  ;;  %v1050_v50 = vrot.slane %v1048_v38, 5 }
  0x43   : > { %v1053_v51 = vrot.slane %v1051_v40, 6  ;;  %v275_v54 = vor.u32 %v274_v44, %v271_v43  ;;  %v1042_v57 = vrot.slane %v1040_v45, 5  ;;  %v921_v59 = vrot.slane %v1464_v47, %v1817_v5 }
  0x44   : > { %404 = vrot.lane.b32.xlu0 %v401_v3, %s1707_s28  ;;  %v233_v56 = vrot.slane %v219_v48, %v1817_v5  ;;  %v1045_v58 = vrot.slane %v1043_v46, 6  ;;  %v1077_v62 = vcombine.high %v1467_v55, %v1467_v55  ;;  %v226_v63 = vrot.slane %v217_v41, %v1817_v5 }
  0x45   : > { %v1054_v61 = vor.u32 %v1053_v51, %v1050_v50  ;;  %v2526_v0 = vmov 0  ;;  %v930_v3 = vshll.u32 %v921_v59, 16  ;;  %v937_v4 = vshrl.u32 %v921_v59, 16 }
  0x46   : > { %657 = vrot.lane.b32.xlu1 %v649_v8, %s1708_s29  ;;  %v249_v60 = vsel %vm1904_vm2, %v233_v56, %v248_v53  ;;  %v2527_v0 = vsel %vm1918_vm6, 4294967295, %v2526_v0  ;;  %v1046_v2 = vor.u32 %v1045_v58, %v1042_v57  ;;  %v2528_v6 = vmov 0 }
  0x47   : > { %250 = vst [vmem:[#allocation2 + $0x8] sm:$0x3] %v249_v60  ;;  %v2529_v6 = vsel %vm1924_vm8, 4294967295, %v2528_v6  ;;  %v1091_v7 = vrot.slane %v1077_v62, %v1817_v5  ;;  %v914_v8 = vcombine.high %v1464_v47, %v1464_v47  ;;  %v2530_v9 = vmov 0  ;;  %v1122_v60 = vld [vmem:[%s2483_s3] sm:$0xff] }
  0x48   : > { %617 = vrot.lane.b32.xlu0 %v608_v11, %s1705_s23  ;;  %v2531_v9 = vsel %vm1935_vm10, 4294967295, %v2530_v9  ;;  %v244_v10 = vsel %vm2487_vm9, %v226_v63, %v243_v1  ;;  %v1462_v11 = vld [vmem:[%s1822_s11 + $0x6] sm:$0x3f]  ;;  %v1084_v12 = vrot.slane %v1467_v55, %v1817_v5  ;;  %v1950_v13 = vrot.slane %v930_v3, 5  ;;  %s1716_s11 = smov 31   ;;  %vm2010_vm9 = vmand %vm2496_vm7, %vm457_vm0  ;;  %s1481_s23 = sld [smem:[#allocation3 + $0x1]] }
  0x49   : > { %245 = vst [vmem:[#allocation2] sm:$0x33] %v244_v10  ;;  %v769_v18 = vcombine.high %v1871_v15, %v1871_v15  ;;  %v677_v19 = vcombine.high %v1879_v20, %v1879_v20  ;;  %v833_v22 = vrot.slane %v1462_v11, %v1817_v5  ;;  %v2532_v20 = vmov 0  ;;  %v460_v10 = vld [vmem:[#allocation2 + $0x14] sm:$0xcc] }
  0x4a   : > { %507 = vrot.lane.b32.xlu1 %v497_v16, %s1706_s27  ;;  %v939_v16 = vrot.slane %v937_v4, 4  ;;  %v2533_v20 = vsel %vm1965_vm14, 4294967295, %v2532_v20  ;;  %v715_v14 = vcombine.high %v1460_v21, %v1460_v21  ;;  %v890_v36 = vrot.slane %v1874_v17, %v1817_v5 }
  0x4b   : > { %v783_v25 = vrot.slane %v769_v18, %v1817_v5  ;;  %v691_v15 = vrot.slane %v677_v19, %v1817_v5  ;;  %v842_v28 = vshrl.u32 %v833_v22, 16  ;;  %v845_v37 = vshll.u32 %v833_v22, 16  ;;  %v577_v22 = vld [vmem:[#allocation2 + $0x28] sm:$0x66] }
  0x4c   : > { %659 = vrot.lane.b32.xlu0 %v656_v23, %s1708_s29  ;;  %v928_v23 = vrot.slane %v914_v8, %v1817_v5  ;;  %v940_v24 = vor.u32 %v939_v16, %v1950_v13  ;;  %v826_v45 = vcombine.high %v1462_v11, %v1462_v11  ;;  %v1717_v56 = vmov 0  }
  0x4d   : > { %v785_v26 = vrot.slane %v783_v25, 5  ;;  %v844_v38 = vrot.slane %v842_v28, 7  ;;  %1230 = vmatprep.mubr.bf16.mxu0 %v1717_v56  ;;  %1271 = vmatprep.mubr.bf16.mxu1 %v1717_v56  ;;  %vm2492_vm12 = vcmask 1043458   ;;  %v2538_v62 = vmov 0 }
  0x4e   : > { %692 = vrot.lane.b32.xlu1 %v684_v27, %s1709_s30  ;;  %v722_v27 = vrot.slane %v1460_v21, %v1817_v5  ;;  %v934_v29 = vshll.u32 %v928_v23, 16  ;;  %v942_v31 = vshrl.u32 %v928_v23, 16  ;;  %v941_v34 = vrot.slane %v940_v24, 4  ;;  %1585 = vset.pattern.permute.xlu0 %v1717_v56  ;;  %vm2005_vm11 = vmand %vm2492_vm12, %vm2491_vm4 }
  0x4f   : > { %v787_v43 = vrot.slane %v785_v26, 4  ;;  %v847_v46 = vor.u32 %v845_v37, %v844_v38  ;;  %v840_v50 = vrot.slane %v826_v45, %v1817_v5  ;;  %1584 = vset.pattern.permute.xlu1 %v1717_v56  ;;  %v2539_v62 = vsel %vm2010_vm9, 4294967295, %v2538_v62  ;;  %v363_v45 = vld [vmem:[#allocation2 + $0x14] sm:$0x11] }
  0x50   : > { %509 = vrot.lane.b32.xlu0 %v502_v32, %s1706_s27  ;;  %v2534_v32 = vmov 0  ;;  %v936_v40 = vrot.slane %v934_v29, 5  ;;  %v944_v41 = vrot.slane %v942_v31, 4  ;;  %vm2498_vm13 = vcmask 1046533   ;;  %v303_v37 = vld [vmem:[#allocation2] sm:$0x66] }
  0x51   : > { %v2535_v32 = vsel %vm1973_vm15, 4294967295, %v2534_v32  ;;  %v849_v55 = vshrl.u32 %v840_v50, 16  ;;  %v852_v58 = vshll.u32 %v840_v50, 16  ;;  %vm574_vm14 = vsmask.f32 6400  ;;  %s205_s27 = sand.u32 1, %s1688_s16  }
  0x52   : > { %891 = vrot.lane.b32.xlu1 %v883_v35, %s1710_s5  ;;  %v734_v35 = vshll.u32 %v722_v27, 16  ;;  %v945_v47 = vor.u32 %v944_v41, %v936_v40  ;;  %vm2501_vm12 = vcmask 256001   ;;  %vm572_vm5 = vsmask.f32 2304  ;;  %v308_v41 = vld [vmem:[#allocation2 + $0x8] sm:$0x6] }
  0x53   : > { %vm2506_vm15 = vcmask 1043456   ;;  %vm2020_vm0 = vmand %vm2497_vm1, %vm572_vm5  ;;  %vm449_vm7 = vcmask 891904   ;;  %vm2505_vm1 = vcmask 518145   ;;  %vm2509_vm10 = vcmask 1044484  }
  0x54   : > { %792 = vrot.lane.b32.xlu0 %v786_v42, %s1711_s6  ;;  %v729_v42 = vrot.slane %v715_v14, %v1817_v5  ;;  %v736_v44 = vrot.slane %v734_v35, 7  ;;  %v946_v51 = vrot.slane %v945_v47, 4  ;;  %v851_v5 = vrot.slane %v849_v55, 7  ;;  %vm580_vm4 = vmand %vm2501_vm12, %vm572_vm5 }
  0x55   : > { %vm2508_vm12 = vsmask.f32 256  ;;  %vm2510_vm6 = vsmask.f32 7942  ;;  %vm528_vm8 = vsmask.f32 7966 }
  0x56   : > { %402 = vrot.lane.b32.xlu1 %v394_v49, %s1707_s28  ;;  %v739_v17 = vshrl.u32 %v729_v42, 16  ;;  %v742_v48 = vshll.u32 %v729_v42, 16  ;;  %v854_v59 = vor.u32 %v852_v58, %v851_v5  ;;  %s1501_s28 = smul.u32 48, %s205_s27 }
  0x58   : > { %284 = vrot.lane.b32.xlu0 %v275_v54, %s1704_s22  ;;  %v741_v53 = vrot.slane %v739_v17, 6  ;;  %v744_v54 = vrot.slane %v742_v48, 7  ;;  %s1320_s22 = sld [smem:[#allocation3]]  ;;  %s2419_s29 = scalar_lea.vmem [#allocation6], %s1501_s28 }
  0x5a   : > { %1057 = vrot.lane.b32.xlu1 %v1054_v61, %s1712_s7  ;;  %v745_v57 = vor.u32 %v744_v54, %v741_v53  ;;  %v465_v61 = vld [vmem:[#allocation2 + $0x1c] sm:$0xc] }
  0x5c   : > { %1055 = vrot.lane.b32.xlu0 %v1046_v2, %s1712_s7 }
  0x5e   : > { %1094 = vrot.lane.b32.xlu1 %v1091_v7, %s1713_s8 }
  0x60   : > { %1092 = vrot.lane.b32.xlu0 %v1084_v12, %s1713_s8  ;;  %v581_v12 = vld [vmem:[#allocation2 + $0x30] sm:$0x6] }
  0x62   : > { %334 = vrot.lane.b32.xlu1 %v329_v39, %s1703_s20  ;;  %v731_v39 = vshrl.u32 %v722_v27, 16  ;;  %v1019_v27 = vld [vmem:[#allocation2 + $0x38] sm:$0x6] }
  0x64   : > { %332 = vrot.lane.b32.xlu0 %v1849_v33, %s1703_s20  ;;  %v733_v33 = vrot.slane %v731_v39, 6  ;;  %v368_v39 = vld [vmem:[#allocation2 + $0x1c] sm:$0x1] }
  0x66   : > { %694 = vrot.lane.b32.xlu1 %v691_v15, %s1709_s30  ;;  %v737_v49 = vor.u32 %v736_v44, %v733_v33  ;;  %s1721_s30 = smov 96  }
  0x68   : > { %951 = vrot.lane.b32.xlu0 %v941_v34, %s1714_s9 }
  0x6a   : > { %893 = vrot.lane.b32.xlu1 %v890_v36, %s1710_s5  ;;  %s1503_s5 = smul.u32 768, %s1771_s19  ;;  %s2440_s19 = scalar_lea.sflag [#allocation4], %s205_s27 }
  0x6c   : > { %794 = vrot.lane.b32.xlu0 %v787_v43, %s1711_s6 }
  0x6e   : > { %855 = vrot.lane.b32.xlu1 %v847_v46, %s1715_s10 }
  0x70   : > { %746 = vrot.lane.b32.xlu0 %v737_v49, %s1716_s11 }
  0x72   : > { %953 = vrot.lane.b32.xlu1 %v946_v51, %s1714_s9 }
  0x74   : > { %947 = vrot.lane.b32.xlu0 %v1950_v13, %s1714_s9 }
  0x76   : > { %748 = vrot.lane.b32.xlu1 %v745_v57, %s1716_s11  ;;  %s1722_s11 = smov [#allocation6]  }
  0x77   : > { %s1636_s12 = sshll.u32 %s1722_s11, 4  ;;  %s1637_s12 = int_to_ptr.vmem [resolvable:$false] %s1636_s12 }
  0x78   : > { %788 = vrot.lane.b32.xlu0 %v1892_v30, %s1711_s6  ;;  %s1638_s13 = scalar_lea.vmem %s1637_s12, 1536 }
  0x7a   : > { %949 = vrot.lane.b32.xlu1 %v936_v40, %s1714_s9  ;;  %s2431_s9 = scalar_lea.hbm %s2484_s4, %s1503_s5 }
  0x7c   : > { %857 = vrot.lane.b32.xlu0 %v854_v59, %s1715_s10 }
  0x7e   : > { %1125 = vperm.xlu1 %1584, %v1122_v60  }
  0x80   : > { %790 = vrot.lane.b32.xlu0 %v785_v26, %s1711_s6  ;;  %s1377_s6 = sshll.u32 %s2419_s29, 4  ;;  %s2433_s6 = int_to_ptr.vmem [resolvable:$true] %s1377_s6 }
  0x81   : > { %s1632_s10 = scalar_lea.vmem %s2433_s6, 768  ;;  %p1639_p13 = scmp.lt.s32.totalorder %s2433_s6, %s1637_s12 }
  0x82   : > { %p1633_p9 = scmp.ne.s32.totalorder %s2433_s6, %s1632_s10  ;;  %p1640_p0 = scmp.lt.s32.totalorder %s1638_s13, %s1632_s10 }
  0x84   : > { %p1634_p10 = pnand %p1633_p9, %p1788_p5  ;;  %p1641_p1 = por %p1640_p0, %p1639_p13 }
  0x86   : > { %p1635_p12 = pneg %p1634_p10 }
  0x88   : > { %p1642_p2 = pnand %p1641_p1, %p1635_p12 }
  0xa0   : > { %v445_v63 = vpop.permute.xlu1 %444 }
  0xa1   : > { %v447_v1 = vrot.slane %v445_v63, 4  ;;  %v466_v2 = vsel %vm464_vm3, %v445_v63, %v465_v61  ;;  %vm2025_vm3 = vmand %vm2498_vm13, %vm574_vm14  ;;  %vm568_vm13 = vcmask 752640  }
  0xa2   : > { %467 = vst [vmem:[#allocation2 + $0x1c] sm:$0xc] %v466_v2  ;;  %v443_v3 = vpop.permute.xlu0 %442  ;;  %vm2544_vm14 = vmor %vm2010_vm9, %vm2005_vm11  ;;  %vm2507_vm11 = vcmask 253952   ;;  %vm360_vm9 = vsmask.f32 4352 }
  0xa3   : > { %v446_v7 = vrot.slane %v443_v3, 4 }
  0xa4   : > { %v562_v11 = vpop.permute.xlu1 %561 }
  0xa5   : > { %v448_v13 = vsel %vm2506_vm15, %v446_v7, %v447_v1  ;;  %v565_v16 = vrot.slane %v562_v11, 4 }
  0xa6   : > { %v450_v18 = vsel %vm449_vm7, %v443_v3, %v448_v13  ;;  %v564_v19 = vpop.permute.xlu0 %563  ;;  %vm1018_vm7 = vmand %vm2505_vm1, %vm572_vm5 }
  0xa7   : > { %v461_v21 = vsel %vm2544_vm14, %v450_v18, %v460_v10  ;;  %v566_v23 = vrot.slane %v564_v19, 4  ;;  %v582_v24 = vsel %vm580_vm4, %v564_v19, %v581_v12  ;;  %vm356_vm14 = vcmask 1040384   ;;  %vm2545_vm4 = vmor %vm2025_vm3, %vm2020_vm0 }
  0xa8   : > { %462 = vst [vmem:[#allocation2 + $0x14] sm:$0xcc] %v461_v21  ;;  %583 = vst [vmem:[#allocation2 + $0x30] sm:$0x6] %v582_v24  ;;  %v2041_v25 = vpop.permute.xlu1 %1002 }
  0xa9   : > { %v567_v15 = vsel %vm2506_vm15, %v565_v16, %v566_v23  ;;  %vm2056_vm1 = vmand %vm2507_vm11, %vm2508_vm12  ;;  %v1006_v56 = vrot.slane %v2041_v25, 4  ;;  %v536_v61 = vld [vmem:[#allocation2 + $0x1c] sm:$0x8] }
  0xaa   : > { %v569_v28 = vsel %vm568_vm13, %v562_v11, %v567_v15  ;;  %v2046_v29 = vpop.permute.xlu0 %1004  ;;  %vm2511_vm13 = vsmask.f32 7946  ;;  %vm2061_vm15 = vmand %vm356_vm14, %vm2508_vm12  ;;  %vm2555_vm14 = vcmask 257026  }
  0xab   : > { %v578_v31 = vsel %vm2545_vm4, %v569_v28, %v577_v22  ;;  %v1020_v14 = vsel %vm1018_vm7, %v2046_v29, %v1019_v27  ;;  %vm2066_vm0 = vmand %vm2509_vm10, %vm360_vm9  ;;  %vm2512_vm7 = vcmask 1042689   ;;  %vm2552_vm4 = vcmask 256001  }
  0xac   : > { %579 = vst [vmem:[#allocation2 + $0x28] sm:$0x66] %v578_v31  ;;  %1021 = vst [vmem:[#allocation2 + $0x38] sm:$0x6] %v1020_v14  ;;  %v337_v26 = vpop.permute.xlu1 %336  ;;  %vm2562_vm9 = vcmask 254976   ;;  %v1007_v57 = vrot.slane %v2046_v29, 4 }
  0xad   : > { %v342_v36 = vrot.slane %v337_v26, 4  ;;  %vm2072_vm11 = vmand %vm2552_vm4, %vm2510_vm6  ;;  %vm2561_vm4 = vsmask.f32 7938  ;;  %v671_v29 = vld [vmem:[#allocation2 + $0x44] sm:$0x3] }
  0xae   : > { %v339_v38 = vpop.permute.xlu0 %338  ;;  %vm2080_vm12 = vmand %vm2555_vm14, %vm2511_vm13  ;;  %vm2560_vm14 = vcmask 1043456   ;;  %vm2515_vm13 = vsmask.f32 7950 }
  0xaf   : > { %v343_v42 = vrot.slane %v339_v38, 4  ;;  %v369_v43 = vsel %vm2056_vm1, %v339_v38, %v368_v39  ;;  %vm2092_vm1 = vmand %vm2512_vm7, %vm572_vm5  ;;  %v637_v48 = vld [vmem:[#allocation2 + $0x30] sm:$0xc]  ;;  %vm2565_vm5 = vcmask 1031168   ;;  %vm2516_vm7 = vcmask 1047559  }
  0xb0   : > { %370 = vst [vmem:[#allocation2 + $0x1c] sm:$0x1] %v369_v43  ;;  %v2084_v44 = vpop.permute.xlu1 %286  ;;  %vm2102_vm10 = vmand %vm2562_vm9, %vm2561_vm4  ;;  %v531_v19 = vld [vmem:[#allocation2 + $0x14] sm:$0x88] }
  0xb1   : > { %v347_v47 = vsel %vm2560_vm14, %v342_v36, %v343_v42  ;;  %v309_v17 = vsel %vm2072_vm11, %v2084_v44, %v308_v41  ;;  %vm2566_vm11 = vmor %vm2066_vm0, %vm2061_vm15  ;;  %vm2567_vm14 = vcmask 1043459   ;;  %v668_v36 = vld [vmem:[#allocation2 + $0x3c] sm:$0x33] }
  0xb2   : > { %310 = vst [vmem:[#allocation2 + $0x8] sm:$0x6] %v309_v17  ;;  %v620_v49 = vpop.permute.xlu0 %619  ;;  %v348_v51 = vsel %vm2565_vm5, %v337_v26, %v347_v47  ;;  %vm2116_vm6 = vmand %vm2567_vm14, %vm2515_vm13  ;;  %vm630_vm5 = vsmask.f32 7962  ;;  %vm2573_vm14 = vsmask.f32 7946 }
  0xb3   : > { %v638_v53 = vsel %vm2080_vm12, %v620_v49, %v637_v48  ;;  %v364_v54 = vsel %vm2566_vm11, %v348_v51, %v363_v45  ;;  %vm2570_vm12 = vcmask 257027   ;;  %vm2125_vm15 = vmand %vm2516_vm7, %vm528_vm8  ;;  %vm1009_vm8 = vcmask 1014784   ;;  %v633_v14 = vld [vmem:[#allocation2 + $0x28] sm:$0xcc] }
  0xb4   : > { %639 = vst [vmem:[#allocation2 + $0x30] sm:$0xc] %v638_v53  ;;  %v1581_v5 = vpop.permute.xlu1 %1580  ;;  %365 = vst [vmem:[#allocation2 + $0x14] sm:$0x11] %v364_v54  ;;  %vm2577_vm7 = vcmask 1043456   ;;  %v622_v22 = vrot.slane %v620_v49, 4 }
  0xb5   : > { %vm535_vm9 = vmand %vm2570_vm12, %vm2515_vm13  ;;  %v1583_v58 = vunpack.i.h.bf16 %v1581_v5  ;;  %v1582_v59 = vunpack.i.l.bf16 %v1581_v5  ;;  %vm2574_vm12 = vcmask 1043458   ;;  %v1008_v7 = vsel %vm2577_vm7, %v1006_v56, %v1007_v57 }
  0xb6   : > { %v2133_v30 = vpop.permute.xlu0 %404  ;;  %vm2137_vm13 = vmand %vm2574_vm12, %vm2573_vm14  ;;  %vm2579_vm14 = vcmask 1047558   ;;  %vm624_vm12 = vcmask 744448   ;;  %v1010_v21 = vsel %vm1009_vm8, %v2041_v25, %v1008_v7  ;;  %vm2586_vm8 = vsmask.f32 3328 }
  0xb7   : > { %v511_v63 = vrot.slane %v1583_v58, 4  ;;  %v512_v1 = vrot.slane %v1582_v59, 4  ;;  %v422_v2 = vld [vmem:[#allocation2 + $0x1c] sm:$0x3]  ;;  %v537_v4 = vsel %vm535_vm9, %v1582_v59, %v536_v61  ;;  %vm530_vm4 = vmor %vm2125_vm15, %vm2116_vm6  ;;  %v407_v61 = vrot.slane %v2133_v30, 4 }
  0xb8   : > { %v423_v10 = vsel %vm2102_vm10, %v2133_v30, %v422_v2  ;;  %v658_v11 = vpop.permute.xlu1 %657  ;;  %538 = vst [vmem:[#allocation2 + $0x1c] sm:$0x8] %v537_v4  ;;  %vm2578_vm11 = vmmov %vm2577_vm7  ;;  %vm2582_vm7 = vcmask 883712  }
  0xb9   : > { %v515_v12 = vsel %vm2578_vm11, %v511_v63, %v512_v1  ;;  %424 = vst [vmem:[#allocation2 + $0x1c] sm:$0x3] %v423_v10  ;;  %vm2152_vm9 = vmand %vm2579_vm14, %vm630_vm5  ;;  %v661_v25 = vrot.slane %v658_v11, 4  ;;  %v705_v47 = vld [vmem:[#allocation2 + $0x8] sm:$0x33] }
  0xba   : > { %v517_v16 = vsel %vm2582_vm7, %v1583_v58, %v515_v12  ;;  %v618_v18 = vpop.permute.xlu0 %617  ;;  %vm2583_vm6 = vmor %vm2025_vm3, %vm2092_vm1  ;;  %vm664_vm3 = vcmask 736256   ;;  %vm2590_vm7 = vnez %v2527_v0 }
  0xbb   : > { %v1015_v23 = vld [vmem:[#allocation2 + $0x30] sm:$0x66]  ;;  %v621_v24 = vrot.slane %v618_v18, 4  ;;  %v532_v27 = vsel %vm530_vm4, %v517_v16, %v531_v19  ;;  %vm632_vm10 = vmor %vm2152_vm9, %vm2137_vm13  ;;  %vm2517_vm13 = vcmask 261120   ;;  %vm2519_vm4 = vcmask 1040640  }
  0xbc   : > { %v1016_v15 = vsel %vm2583_vm6, %v1010_v21, %v1015_v23  ;;  %v508_v28 = vpop.permute.xlu1 %507  ;;  %533 = vst [vmem:[#allocation2 + $0x14] sm:$0x88] %v532_v27  ;;  %vm2584_vm5 = vmmov %vm2578_vm11  ;;  %vm2518_vm11 = vcmask 1043714   ;;  %vm2592_vm6 = vcmask 253952   ;;  %v1072_v21 = vld [vmem:[#allocation2 + $0x38] sm:$0xc] }
  0xbd   : > { %1017 = vst [vmem:[#allocation2 + $0x30] sm:$0x66] %v1016_v15  ;;  %v623_v31 = vsel %vm2584_vm5, %v621_v24, %v622_v22  ;;  %v513_v40 = vrot.slane %v508_v28, 4  ;;  %vm2585_vm1 = vmmov %vm2584_vm5 }
  0xbe   : > { %v625_v8 = vsel %vm624_vm12, %v618_v18, %v623_v31  ;;  %v660_v34 = vpop.permute.xlu0 %659  ;;  %vm2177_vm14 = vmand %vm2518_vm11, %vm2586_vm8  ;;  %vm2602_vm11 = vcmask 1042433   ;;  %v418_v18 = vld [vmem:[#allocation2 + $0x14] sm:$0x33] }
  0xbf   : > { %v634_v26 = vsel %vm632_vm10, %v625_v8, %v633_v14  ;;  %v662_v39 = vrot.slane %v660_v34, 4  ;;  %v672_v35 = vsel %vm1904_vm2, %v660_v34, %v671_v29  ;;  %vm2589_vm2 = vnez %v2529_v6  ;;  %v904_v57 = vld [vmem:[#allocation2 + $0x1c] sm:$0xcc]  ;;  %v1106_v29 = vld [vmem:[#allocation2 + $0x4c] sm:$0x3] }
  0xc0   : > { %635 = vst [vmem:[#allocation2 + $0x28] sm:$0xcc] %v634_v26  ;;  %673 = vst [vmem:[#allocation2 + $0x44] sm:$0x3] %v672_v35  ;;  %v2171_v38 = vpop.permute.xlu1 %692  ;;  %vm2593_vm10 = vnez %v2531_v9  ;;  %v816_v63 = vld [vmem:[#allocation2 + $0x1c] sm:$0x11] }
  0xc1   : > { %v663_v41 = vsel %vm2585_vm1, %v661_v25, %v662_v39  ;;  %v696_v42 = vrot.slane %v2171_v38, 4  ;;  %vm2591_vm12 = vmor %vm2589_vm2, %vm2590_vm7  ;;  %vm2595_vm1 = vsmask.f32 256  ;;  %vm2598_vm7 = vnez %v2539_v62 }
  0xc2   : > { %v665_v52 = vsel %vm664_vm3, %v658_v11, %v663_v41  ;;  %v510_v33 = vpop.permute.xlu0 %509  ;;  %vm2594_vm5 = vmor %vm2589_vm2, %vm2593_vm10  ;;  %vm2520_vm3 = vcmask 105472   ;;  %v1718_v62 = vmov 65535   ;;  %v289_v11 = vrot.slane %v2084_v44, 4 }
  0xc3   : > { %v669_v45 = vsel %vm2591_vm12, %v665_v52, %v668_v36  ;;  %v698_v46 = vsel %vm2517_vm13, %v696_v42, %v2171_v38  ;;  %v514_v17 = vrot.slane %v510_v33, 4  ;;  %541 = vst.msk [vmem:[#allocation2 + $0x30] sm:$0x1] %vm2592_vm6, %v510_v33  ;;  %vm2200_vm8 = vmand %vm2519_vm4, %vm2595_vm1  ;;  %vm2599_vm6 = vcmask 1043456  }
  0xc4   : > { %670 = vst [vmem:[#allocation2 + $0x3c] sm:$0x33] %v669_v45  ;;  %v706_v48 = vsel %vm2594_vm5, %v698_v46, %v705_v47  ;;  %v2196_v0 = vpop.permute.xlu1 %891  ;;  %vm2600_vm13 = vcmask 883712   ;;  %vm2601_vm5 = vsmask.f32 7942  ;;  %vm2611_vm12 = vcmask 1044480  }
  0xc5   : > { %707 = vst [vmem:[#allocation2 + $0x8] sm:$0x33] %v706_v48  ;;  %v518_v50 = vsel %vm2599_vm6, %v513_v40, %v514_v17  ;;  %v895_v51 = vrot.slane %v2196_v0, 4  ;;  %vm815_vm6 = vmor %vm2066_vm0, %vm2200_vm8  ;;  %v1181_v4 = vsel %vm2611_vm12, 4294967295, %v1718_v62  ;;  %vm2616_vm12 = vcmask 1043456  }
  0xc6   : > { %v519_v53 = vsel %vm2600_vm13, %v508_v28, %v518_v50  ;;  %v2211_v54 = vpop.permute.xlu0 %792  ;;  %vm2224_vm1 = vmand %vm2602_vm11, %vm2601_vm5  ;;  %vm2606_vm13 = vcmask 244736   ;;  %vm2607_vm11 = vsmask.f32 7958  ;;  %vm2608_vm5 = vcmask 1046533   ;;  %v1068_v52 = vld [vmem:[#allocation2 + $0x30] sm:$0xcc] }
  0xc7   : > { %539 = vst [vmem:[#allocation2 + $0x28] sm:$0x11] %v519_v53  ;;  %v897_v55 = vsel %vm2520_vm3, %v895_v51, %v2196_v0  ;;  %v797_v56 = vrot.slane %v2211_v54, 4  ;;  %vm2605_vm3 = vmor %vm2598_vm7, %vm2177_vm14  ;;  %vm292_vm14 = vcmask 1039360   ;;  %vm2613_vm7 = vcmask 519170  }
  0xc8   : > { %v403_v5 = vpop.permute.xlu1 %402  ;;  %v905_v59 = vsel %vm2605_vm3, %v897_v55, %v904_v57  ;;  %vm2240_vm4 = vmand %vm2608_vm5, %vm2607_vm11  ;;  %vm2612_vm3 = vsmask.f32 7946  ;;  %vm2617_vm5 = vcmask 900096   ;;  %vm2618_vm8 = vcmask 1045504   ;;  %v1103_v49 = vld [vmem:[#allocation2 + $0x44] sm:$0x33] }
  0xc9   : > { %v801_v1 = vsel %vm2606_vm13, %v797_v56, %v2211_v54  ;;  %v406_v2 = vrot.slane %v403_v5, 4  ;;  %906 = vst [vmem:[#allocation2 + $0x1c] sm:$0xcc] %v905_v59  ;;  %vm2252_vm13 = vmand %vm2613_vm7, %vm2612_vm3  ;;  %v2264_v23 = vsel %vm2618_vm8, %v1181_v4, 0  ;;  %vm2620_vm3 = vnez %v2533_v20  ;;  %v2370_v28 = vld [vmem:[%s2482_s2] sm:$0xf] }
  0xca   : > { %v817_v30 = vsel %vm815_vm6, %v801_v1, %v816_v63  ;;  %v285_v7 = vpop.permute.xlu0 %284  ;;  %vm2619_vm6 = vnez %v2535_v32  ;;  %vm2623_vm11 = vcmask 1043714   ;;  %vm2626_vm8 = vsmask.f32 1280 }
  0xcb   : > { %818 = vst [vmem:[#allocation2 + $0x1c] sm:$0x11] %v817_v30  ;;  %v408_v12 = vsel %vm2616_vm12, %v406_v2, %v407_v61  ;;  %v288_v16 = vrot.slane %v285_v7, 4  ;;  %vm2621_vm7 = vmor %vm2619_vm6, %vm2620_vm3  ;;  %vm2627_vm3 = vcmask 517120   ;;  %v821_v30 = vld [vmem:[#allocation2 + $0x24] sm:$0x1] }
  0xcc   : > { %v410_v19 = vsel %vm2617_vm5, %v403_v5, %v408_v12  ;;  %v1058_v22 = vpop.permute.xlu1 %1057  ;;  %vm2622_vm5 = vsmask.f32 7946  ;;  %v710_v5 = vld [vmem:[#allocation2 + $0x10] sm:$0x3] }
  0xcd   : > { %v419_v44 = vsel %vm2621_vm7, %v410_v19, %v418_v18  ;;  %v291_v24 = vsel %vm2616_vm12, %v288_v16, %v289_v11  ;;  %v1060_v27 = vrot.slane %v1058_v22, 4  ;;  %v1073_v15 = vsel %vm2252_vm13, %v1058_v22, %v1072_v21  ;;  %vm2276_vm0 = vmand %vm2623_vm11, %vm2622_vm5 }
  0xce   : > { %420 = vst [vmem:[#allocation2 + $0x14] sm:$0x33] %v419_v44  ;;  %v293_v25 = vsel %vm292_vm14, %v285_v7, %v291_v24  ;;  %1074 = vst [vmem:[#allocation2 + $0x38] sm:$0xc] %v1073_v15  ;;  %v1056_v20 = vpop.permute.xlu0 %1055  ;;  %vm1062_vm11 = vcmask 1006592  }
  0xcf   : > { %vm2283_vm7 = vmand %vm2627_vm3, %vm2626_vm8  ;;  %v1604_v14 = vld [vmem:[#allocation2 + $0x2c] ss:$20 sps:$4 sm:$0x3f]   ;;  %v1059_v34 = vrot.slane %v1056_v20, 4  ;;  %vm2635_vm3 = vcmask 261120  }
  0xd0   : > { %vm2630_vm13 = vmor %vm2240_vm4, %vm2224_vm1  ;;  %v1606_v26 = vld [vmem:[#allocation2 + $0x28] ss:$20 sps:$4 sm:$0x3f]   ;;  %v1095_v39 = vpop.permute.xlu1 %1094  ;;  %v1187_v35 = vand.u32 %v1604_v14, %v2264_v23  ;;  %vm1099_vm1 = vcmask 998400  }
  0xd1   : > { %v304_v8 = vsel %vm2630_vm13, %v293_v25, %v303_v37  ;;  %vm1067_vm14 = vmor %vm2152_vm9, %vm2276_vm0  ;;  %v1061_v36 = vsel %vm2616_vm12, %v1059_v34, %v1060_v27  ;;  %v1097_v40 = vrot.slane %v1095_v39, 4  ;;  %v1107_v41 = vsel %vm2283_vm7, %v1095_v39, %v1106_v29  ;;  %v759_v25 = vld [vmem:[#allocation2 + $0x8] sm:$0x66] }
  0xd2   : > { %305 = vst [vmem:[#allocation2] sm:$0x66] %v304_v8  ;;  %v1184_v43 = vand.u32 %v1606_v26, %v2264_v23  ;;  %v1063_v33 = vsel %vm1062_vm11, %v1056_v20, %v1061_v36  ;;  %1108 = vst [vmem:[#allocation2 + $0x4c] sm:$0x3] %v1107_v41  ;;  %v1093_v45 = vpop.permute.xlu0 %1092  ;;  %1210 = vmatprep.subr.bf16.mxu0 %v1187_v35  ;;  %vm2632_vm0 = vcmask 257027   ;;  %vm2637_vm11 = vcmask 519170  }
  0xd3   : > { %v1069_v46 = vsel %vm1067_vm14, %v1063_v33, %v1068_v52  ;;  %v1096_v13 = vrot.slane %v1093_v45, 4  ;;  %vm2631_vm9 = vmmov %vm2616_vm12  ;;  %vm2636_vm13 = vsmask.f32 3328  ;;  %vm2640_vm12 = vcmask 1031168   ;;  %v867_v21 = vld [vmem:[#allocation2 + $0x1c] sm:$0x33] }
  0xd4   : > { %1211 = vmatpush1.bf16.msra.mxu0 %v1184_v43  ;;  %1070 = vst [vmem:[#allocation2 + $0x30] sm:$0xcc] %v1069_v46  ;;  %v335_v47 = vpop.permute.xlu1 %334  ;;  %vm2633_vm5 = vmor %vm2589_vm2, %vm2593_vm10  ;;  %vm957_vm2 = vcmask 97280   ;;  %vm819_vm10 = vcmask 516096   ;;  %v1719_v39 = vmov 0.0  }
  0xd5   : > { %v1098_v17 = vsel %vm2631_vm9, %v1096_v13, %v1097_v40  ;;  %v341_v48 = vrot.slane %v335_v47, 4  ;;  %355 = vst.msk [vmem:[#allocation2 + $0x8] sm:$0x8] %vm2632_vm0, %v335_v47  ;;  %vm2634_vm8 = vmmov %vm2631_vm9  ;;  %vm2642_vm9 = vcmask 1044484   ;;  %v1113_v18 = vld [vmem:[#allocation2 + $0x14] sm:$0xff] }
  0xd6   : > { %v1100_v50 = vsel %vm1099_vm1, %v1093_v45, %v1098_v17  ;;  %v333_v53 = vpop.permute.xlu0 %332  ;;  %vm2314_vm14 = vmand %vm2637_vm11, %vm2636_vm13  ;;  %vm2641_vm1 = vcmask 1040640   ;;  %vm2646_vm13 = vcmask 1041664   ;;  %v969_v43 = vld [vmem:[#allocation2 + $0x1c] sm:$0x88] }
  0xd7   : > { %v1104_v55 = vsel %vm2633_vm5, %v1100_v50, %v1103_v49  ;;  %v340_v57 = vrot.slane %v333_v53, 4  ;;  %vm979_vm0 = vmor %vm2642_vm9, %vm2641_vm1  ;;  %vm2643_vm5 = vcmask 105472   ;;  %vm860_vm1 = vcmask 113664  }
  0xd8   : > { %1105 = vst [vmem:[#allocation2 + $0x44] sm:$0x33] %v1104_v55  ;;  %v695_v58 = vpop.permute.xlu1 %694  ;;  %vm2650_vm9 = vsmask.f32 7942 }
  0xd9   : > { %v344_v59 = vsel %vm2634_vm8, %v340_v57, %v341_v48  ;;  %v699_v61 = vsel %vm2635_vm3, %v696_v42, %v695_v58  ;;  %v909_v42 = vld [vmem:[#allocation2 + $0x24] sm:$0xc]  ;;  %vm2644_vm8 = vsmask.f32 256  ;;  %vm2645_vm3 = vsmask.f32 7938 }
  0xda   : > { %v346_v6 = vsel %vm2640_vm12, %v333_v53, %v344_v59  ;;  %v711_v9 = vsel %vm2283_vm7, %v699_v61, %v710_v5  ;;  %v952_v1 = vpop.permute.xlu0 %951  ;;  %vm820_vm7 = vmand %vm819_vm10, %vm2644_vm8  ;;  %vm2649_vm12 = vcmask 244736   ;;  %vm807_vm8 = vcmask 1043715  }
  0xdb   : > { %353 = vst [vmem:[#allocation2] sm:$0x88] %v346_v6  ;;  %712 = vst [vmem:[#allocation2 + $0x10] sm:$0x3] %v711_v9  ;;  %v956_v38 = vrot.slane %v952_v1, 4 }
  0xdc   : > { %v894_v2 = vpop.permute.xlu1 %893  ;;  %vm2333_vm11 = vmand %vm2646_vm13, %vm2645_vm3  ;;  %vm751_vm3 = vcmask 252928  }
  0xdd   : > { %v960_v62 = vsel %vm957_vm2, %v956_v38, %v952_v1  ;;  %v898_v4 = vsel %vm2643_vm5, %v895_v51, %v894_v2 }
  0xde   : > { %980 = vst.msk [vmem:[#allocation2 + $0x30] sm:$0x11] %vm979_vm0, %v960_v62  ;;  %v910_v7 = vsel %vm2314_vm14, %v898_v4, %v909_v42  ;;  %v795_v10 = vpop.permute.xlu0 %794  ;;  %vm2651_vm0 = vcmask 1042689   ;;  %vm866_vm14 = vmor %vm2619_vm6, %vm2333_vm11  ;;  %vm1175_vm11 = vcmask 220160   ;;  %v1322_v42 = vstv %s1320_s22 }
  0xdf   : > { %911 = vst [vmem:[#allocation2 + $0x24] sm:$0xc] %v910_v7  ;;  %v802_v0 = vsel %vm2649_vm12, %v797_v56, %v795_v10  ;;  %vm2344_vm5 = vmand %vm2651_vm0, %vm2650_vm9  ;;  %v1333_v10 = vstv %s1481_s23 }
  0xe0   : > { %v2340_v51 = vpop.permute.xlu1 %855  ;;  %v822_v16 = vsel %vm820_vm7, %v802_v0, %v821_v30  ;;  %vm758_vm6 = vmor %vm2240_vm4, %vm2344_vm5  ;;  %vm2654_vm7 = vsmask.f32 7950  ;;  %vm811_vm4 = vcmask 519171  }
  0xe1   : > { %v859_v37 = vrot.slane %v2340_v51, 4  ;;  %823 = vst [vmem:[#allocation2 + $0x24] sm:$0x1] %v822_v16  ;;  %vm2363_vm13 = vmand %vm807_vm8, %vm2654_vm7 }
  0xe2   : > { %v747_v54 = vpop.permute.xlu0 %746  ;;  %v1110_v56 = vld [vmem:[#allocation2] sm:$0xff]  ;;  %vm2657_vm12 = vmmov %vm2650_vm9  ;;  %vm2658_vm9 = vcmask 518145   ;;  %v764_v52 = vld [vmem:[#allocation2 + $0x10] sm:$0x6] }
  0xe3   : > { %v1607_v19 = vld [vmem:[#allocation2 + $0x4] ss:$20 sps:$4 sm:$0xff]   ;;  %v861_v22 = vsel %vm860_vm1, %v859_v37, %v2340_v51  ;;  %v750_v32 = vrot.slane %v747_v54, 4  ;;  %v1468_v44 = vcombine.low %v1110_v56, %v1113_v18  ;;  %vm2376_vm0 = vmand %vm2658_vm9, %vm2657_vm12  ;;  %vm2665_vm9 = vcmask 244736  }
  0xe4   : > { %v868_v24 = vsel %vm866_vm14, %v861_v22, %v867_v21  ;;  %v954_v27 = vpop.permute.xlu1 %953  ;;  %1212 = vmatprep.subr.bf16.mxu0 %v1607_v19  ;;  %vm968_vm14 = vmor %vm2125_vm15, %vm2363_vm13  ;;  %vm2661_vm15 = vcmask 1047559   ;;  %vm2664_vm13 = vcmask 517120  }
  0xe5   : > { %869 = vst [vmem:[#allocation2 + $0x1c] sm:$0x33] %v868_v24  ;;  %v752_v29 = vsel %vm751_vm3, %v750_v32, %v747_v54  ;;  %v961_v20 = vsel %vm957_vm2, %v956_v38, %v954_v27  ;;  %1213 = vmatpush1.bf16.msra.mxu0 %v1468_v44  ;;  %v1609_v31 = vld [vmem:[#allocation2 + $0x34] ss:$20 sps:$4 sm:$0x3f]   ;;  %vm809_vm5 = vmor %vm2661_vm15, %vm807_vm8 }
  0xe6   : > { %v760_v8 = vsel %vm758_vm6, %v752_v29, %v759_v25  ;;  %982 = vst.msk [vmem:[#allocation2 + $0x38] sm:$0x1] %vm819_vm10, %v961_v20  ;;  %v948_v34 = vpop.permute.xlu0 %947  ;;  %v1611_v26 = vld [vmem:[#allocation2 + $0x30] ss:$20 sps:$4 sm:$0x3f]   ;;  %1493 = vmatprep.subr.bf16.mxu0 %v1719_v39  ;;  %v1193_v36 = vand.u32 %v1609_v31, %v2264_v23  ;;  %vm1720_vm10 = vmmov 0   ;;  %vm2662_vm6 = vmmov %vm2654_vm7 }
  0xe7   : > { %761 = vst [vmem:[#allocation2 + $0x8] sm:$0x66] %v760_v8  ;;  %v955_v35 = vrot.slane %v948_v34, 4  ;;  %v1190_v40 = vand.u32 %v1611_v26, %v2264_v23  ;;  %vm973_vm7 = vmand %vm811_vm4, %vm2662_vm6  ;;  %v974_v17 = vld [vmem:[#allocation2 + $0x24] sm:$0x8] }
  0xe8   : > { %v749_v3 = vpop.permute.xlu1 %748  ;;  %1478 = vmatmul.mubr.msk.bf16.vlgmr.msra.gmra.mxu0 %vm1175_vm11, %v2370_v28  ;;  %1251 = vmatprep.subr.bf16.mxu1 %v1193_v36  ;;  %v871_v57 = vld [vmem:[#allocation2 + $0x24] sm:$0x3]  ;;  %vm2666_vm8 = vmmov %vm2665_vm9 }
  0xe9   : > { %v958_v41 = vsel %vm957_vm2, %v955_v35, %v948_v34  ;;  %v753_v33 = vsel %vm751_vm3, %v750_v32, %v749_v3  ;;  %1497 = vmatprep.mubr.msk.bf16.mxu0 %vm1720_vm10, %v1719_v39  ;;  %1252 = vmatpush1.bf16.msra.mxu1 %v1190_v40  ;;  %vm2663_vm3 = vsmask.f32 7938 }
  0xea   : > { %v970_v60 = vsel %vm968_vm14, %v958_v41, %v969_v43  ;;  %v765_v45 = vsel %vm2376_vm0, %v753_v33, %v764_v52  ;;  %v789_v46 = vpop.permute.xlu0 %788  ;;  %vm870_vm12 = vmand %vm2664_vm13, %vm2663_vm3 }
  0xeb   : > { %971 = vst [vmem:[#allocation2 + $0x1c] sm:$0x88] %v970_v60  ;;  %766 = vst [vmem:[#allocation2 + $0x10] sm:$0x6] %v765_v45  ;;  %v796_v13 = vrot.slane %v789_v46, 4 }
  0xec   : > { %v950_v47 = vpop.permute.xlu1 %949 }
  0xed   : > { %v799_v48 = vsel %vm2665_vm9, %v796_v13, %v789_v46  ;;  %v959_v49 = vsel %vm957_vm2, %v955_v35, %v950_v47  ;;  %v1612_v50 = vld [vmem:[#allocation2 + $0x38] ss:$20 sps:$4 sm:$0x3f]   ;;  %vm2667_vm2 = vcmask 261120  }
  0xee   : > { %810 = vst.msk [vmem:[#allocation2 + $0x8] sm:$0x88] %vm809_vm5, %v799_v48  ;;  %v858_v53 = vpop.permute.xlu0 %857  ;;  %v975_v55 = vsel %vm973_vm7, %v959_v49, %v974_v17  ;;  %v1196_v58 = vand.u32 %v1612_v50, %v2264_v23 }
  0xef   : > { %v862_v5 = vsel %vm860_vm1, %v859_v37, %v858_v53  ;;  %976 = vst [vmem:[#allocation2 + $0x24] sm:$0x8] %v975_v55  ;;  %vm1352_vm1 = vcmask 785408  }
  0xf0   : > { %v872_v59 = vsel %vm870_vm12, %v862_v5, %v871_v57  ;;  %1494 = vmatpush3.bf16.msra.mxu0 %v1196_v58 }
  0xf1   : > { %873 = vst [vmem:[#allocation2 + $0x24] sm:$0x3] %v872_v59  ;;  %1495 = vmatprep.subr.bf16.mxu0 %v1719_v39 }
  0xf2   : > { %v791_v61 = vpop.permute.xlu0 %790 }
  0xf3   : > { %v800_v63 = vsel %vm2666_vm8, %v796_v13, %v791_v61 }
  0xf4   : > { %812 = vst.msk [vmem:[#allocation2 + $0x10] sm:$0x8] %vm811_vm4, %v800_v63 }
  0xf5   : > { %v1613_v6 = vld [vmem:[#allocation2 + $0xc] ss:$20 sps:$4 sm:$0xff]   ;;  %v1615_v9 = vld [vmem:[#allocation2 + $0x8] ss:$20 sps:$4 sm:$0xff]  }
  0xf6   : > { %1253 = vmatprep.subr.bf16.mxu1 %v1613_v6 }
  0xf7   : > { %1254 = vmatpush1.bf16.msra.mxu1 %v1615_v9 }
  0xf9   : > { %v1126_v23 = vpop.permute.xlu1 %1125 }
  0xfa   : > { %1479 = vmatmul.mubr.msk.bf16.vlgmr.msra.gmra.mxu1 %vm1175_vm11, %v2370_v28 }
  0xfb   : > { %v1616_v1 = vld [vmem:[#allocation2 + $0x10] ss:$20 sps:$4 sm:$0xff]  }
  0xfc   : > { %1496 = vmatpush3.bf16.msra.mxu0 %v1616_v1 }
  0xff   : > { %1498 = vmatmul.mubr.msk.bf16.vlgmr.msra.gmra.mxu0 %vm1175_vm11, %v2370_v28  ;;  %vm2668_vm11 = vmmov %vm2667_vm2 }
 0x1a8   : > { %v1232_v38 = vpop.f32.mrf.mxu0 }
 0x1a9   : > { %v1233_v2 = vadd.f32 %v1232_v38, %v1126_v23 }
 0x1aa   : > { %v1234_v62 = vpop.f32.mrf.mxu0 }
 0x1ab   : > { %v1235_v4 = vadd.f32 %v1234_v62, %v1126_v23  ;;  %v1323_v30 = vadd.f32 %v1322_v42, %v1233_v2 }
 0x1ac   : > { %v1236_v7 = vpop.f32.mrf.mxu0 }
 0x1ad   : > { %v1324_v11 = vadd.f32 %v1322_v42, %v1235_v4  ;;  %v1328_v0 = vmax.f32 %v1323_v30, 0.0 }
 0x1ae   : > { %v1237_v51 = vpop.f32.mrf.mxu0 }
 0x1af   : > { %v1329_v12 = vmax.f32 %v1324_v11, 0.0  ;;  %v1334_v16 = vmul.f32 %v1333_v10, %v1328_v0 }
 0x1b1   : > { %v1335_v37 = vmul.f32 %v1333_v10, %v1329_v12  ;;  %1339 = vst [vmem:[%s2419_s29] sm:$0xff] %v1334_v16 }
 0x1b3   : > { %1340 = vst [vmem:[%s2419_s29 + $0x8] sm:$0xff] %v1335_v37 }
 0x1ba   : > { %v1273_v54 = vpop.f32.mrf.mxu1 }
 0x1bb   : > { %v1274_v56 = vadd.f32 %v1273_v54, %v1126_v23 }
 0x1bc   : > { %v1275_v18 = vpop.f32.mrf.mxu1 }
 0x1bd   : > { %v1325_v19 = vadd.f32 %v1322_v42, %v1274_v56  ;;  %v1276_v21 = vadd.f32 %v1275_v18, %v1126_v23 }
 0x1be   : > { %v1277_v22 = vpop.f32.mrf.mxu1 }
 0x1bf   : > { %v1330_v32 = vmax.f32 %v1325_v19, 0.0  ;;  %v1326_v44 = vadd.f32 %v1322_v42, %v1276_v21  ;;  %v1314_v24 = vpop.f32.mrf.mxu0 }
 0x1c0   : > { %v1315_v27 = vadd.f32 %v1314_v24, %v1126_v23  ;;  %v1278_v15 = vpop.f32.mrf.mxu1 }
 0x1c1   : > { %v1331_v28 = vmax.f32 %v1326_v44, 0.0  ;;  %v1499_v29 = vpop.f32.mrf.mxu0  ;;  %v1336_v25 = vmul.f32 %v1333_v10, %v1330_v32 }
 0x1c2   : > { %v1327_v20 = vadd.f32 %v1322_v42, %v1315_v27 }
 0x1c3   : > { %v1317_v31 = vpop.f32.mrf.mxu0  ;;  %1346 = vrot.lane.b32.xlu0 %v1336_v25, %s1721_s30  ;;  %1342 = vst.msk [vmem:[%s2419_s29 + $0x10] sm:$0xff] %vm2667_vm2, %v1336_v25  ;;  %v1337_v14 = vmul.f32 %v1333_v10, %v1331_v28 }
 0x1c4   : > { %v1332_v8 = vmax.f32 %v1327_v20, 0.0 }
 0x1c5   : > { %v1500_v34 = vpop.f32.mrf.mxu0  ;;  %1348 = vrot.lane.b32.xlu1 %v1337_v14, %s1721_s30 }
 0x1c6   : > { %v1338_v26 = vmul.f32 %v1333_v10, %v1332_v8 }
 0x1c8   : > { %1350 = vrot.lane.b32.xlu0 %v1338_v26, %s1721_s30 }
 0x235   : > { %v1347_v39 = vpop.permute.xlu0 %1346 }
 0x237   : > { %v1349_v35 = vpop.permute.xlu1 %1348 }
 0x238   : > { %v1353_v36 = vsel %vm1352_vm1, %v1347_v39, %v1349_v35 }
 0x239   : > { %1482 = vst [vmem:[%s2419_s29 + $0x18] sm:$0xff] %v1353_v36 }
 0x23a   : > { %v1351_v3 = vpop.permute.xlu0 %1350 }
 0x23b   : > { %v1354_v40 = vsel %vm1352_vm1, %v1349_v35, %v1351_v3  ;;  %1484 = vst.msk [vmem:[%s2419_s29 + $0x28] sm:$0xff] %vm2668_vm11, %v1351_v3 }
 0x23c   : > { %1483 = vst [vmem:[%s2419_s29 + $0x20] sm:$0xff] %v1354_v40 }
 0x23d   : > { %1645 = shalt.err (!%p1642_p2)
}
 0x23e   : > { %s1646_s14 = scalar_lea.hbm %s2431_s9, 768  ;;  %s1650_s23 = scalar_lea.hbm %s2484_s4, 1536 }
 0x23f   : > { %p1647_p3 = scmp.ne.s32.totalorder %s2431_s9, %s1646_s14  ;;  %p1651_p8 = scmp.lt.s32.totalorder %s2431_s9, %s2484_s4 }
 0x240   : > { %p1652_p11 = scmp.lt.s32.totalorder %s1650_s23, %s1646_s14 }
 0x241   : > { %p1648_p4 = pnand %p1647_p3, %p1788_p5 }
 0x242   : > { %p1653_p9 = por %p1652_p11, %p1651_p8 }
 0x243   : > { %p1649_p7 = pneg %p1648_p4 }
 0x245   : > { %p1654_p10 = pnand %p1653_p9, %p1649_p7 }
 0x247   : > { %1657 = shalt.err (!%p1654_p10)
}
 0x248   : > { %s1723_s29 = smov 384   ;;  %s1724_s30 = smov 24  }
 0x249   : > { %1508 = dma.vmem_to_hbm [thread:$0]  (%p1788_p5), %s2433_s6, 768, %s2431_s9, %s2440_s19, %s1723_s29, %s1723_s29, %s1724_s30  }
 0x24a PF: > { %p1520_p12 = scmp.ge.s32.totalorder %s1696_s18, 2  ;;  %s1392_s5 = sand.u32 1, %s1684_s15  }
 0x24b   : > { %s1393_s7 = scalar_lea.sflag [#allocation4], %s1392_s5 }
 0x24c   : > { %p1515_p13 = pnand %p1520_p12, %p1792_p6 }
 0x24e   : > { %p1516_p0 = pneg %p1515_p13 }
 0x250   : > { %1679 = dma.done.wait (%p1516_p0), %s1393_s7, 768  }
 0x251   : > { %1681 = vsyncadd (%p1516_p0), %s1393_s7, 4294966528  ;;  %p15_p1 = scmp.ge.s32.totalorder %s1775_s21, 4   ;;  %s2669_s15 = smov %s1688_s16 }
 0x252   : > { %s2670_s16 = smov %s1692_s17  ;;  %s2671_s17 = smov %s1786_s24 }
 0x253   : > { %s2672_s18 = smov %s1775_s21  ;;  %17 = sbr.rel (!%p15_p1) target bundleno = 4 (0x4), region = 78 }
 0x258   :  { %1398 = vsyncpa [#allocation4], 1 }
 0x259   :  { %1400 = vsyncpa [#allocation4 + $0x1], 1 }
 0x25a   :  { %1401 = vsyncpa [#allocation5], 1 }
 0x25b   :  { %1403 = vsyncpa [#allocation5 + $0x1], 1 }

</bundles_post_ra>
